<compile_context>
chip_gen: v7x
topology: tpu7x:2x2x1
jax: 0.10.0
libtpu: 0.0.40
codegen_flags: <defaults>
</compile_context>

<pallas_src>
import functools

import numpy as np
import jax
import jax.numpy as jnp
from jax import lax
from jax.experimental import pallas as pl
from jax.experimental.pallas import tpu as pltpu


def _round_up(x, m):
    return (x + m - 1) // m * m


def _fused_two_layer_conv_kernel(xf_ref, w1_ref, b1_ref, w2_ref, b2_ref, valid_ref,
                                 conv1_ref, conv2_ref, relu2_ref,
                                 p_ref, r1f_ref,
                                 *, NB, H, Wp, Cp, C1, kh, kw, Lp):
    """Fused conv1 -> relu1 (VMEM only) -> conv2 -> relu2 for NB images.

    xf_ref    : (NB, Cp, Lp)            zero-padded, flattened, channel-major input
                                        (Cp = input channels padded to multiple of 8)
    w1_ref    : (C1, kh*kw*Cp)          stacked-K conv1 weights (col s*Cp+c = W1[:,c,di,dj])
    b1_ref    : (C1, 1)
    w2_ref    : (C2, kh*kw*C1)          stacked-K conv2 weights
    b2_ref    : (C2, 1)
    valid_ref : (1, H*Wp)               1.0 where column t = h*Wp+w has w < W
    conv1_ref : (NB, C1, H*Wp)          conv1 pre-activation (hook capture)
    conv2_ref : (NB, C2, H*Wp)          conv2 pre-activation (hook capture)
    relu2_ref : (NB, C2, H*Wp)          model output
    p_ref     : (kh*kw*max(Cp,C1), H*Wp)  VMEM scratch: stacked-K patches
    r1f_ref   : (C1, NB*Lp)             VMEM scratch: zero-padded flattened relu1
    """
    HWp = H * Wp
    KK1 = kh * kw * Cp
    KK2 = kh * kw * C1

    # Zero the relu1-scratch halos once; the interior (including the wrap
    # columns, which `valid` forces to zero) is fully rewritten every step.
    @pl.when(pl.program_id(0) == 0)
    def _():
        r1f_ref[...] = jnp.zeros_like(r1f_ref)

    valid = valid_ref[...]
    w1 = w1_ref[...]
    b1 = b1_ref[...]
    # ---- conv1 (+bias): one K=KK1 MXU dot per image ------------------------
    for n in range(NB):
        for di in range(kh):
            for dj in range(kw):
                s = di * kw + dj
                off = di * Wp + dj
                # sublane-aligned (8, HWp) slab write into the stacked-K scratch
                p_ref[s * Cp:(s + 1) * Cp, :] = xf_ref[n, :, off:off + HWp]
        acc1 = jnp.dot(w1, p_ref[0:KK1, :],
                       preferred_element_type=jnp.float32) + b1
        conv1_ref[n] = acc1                                # hook: pre-activation
        # relu1 stays on-chip: re-pad it into image n's flat scratch slab.
        r1f_ref[:, n * Lp + Wp + 1:n * Lp + Wp + 1 + HWp] = (
            jnp.maximum(acc1, 0.0) * valid)

    w2 = w2_ref[...]
    b2 = b2_ref[...]
    # ---- conv2 (+bias) + relu2 ----------------------------------------------
    for n in range(NB):
        for di in range(kh):
            for dj in range(kw):
                s = di * kw + dj
                off = n * Lp + di * Wp + dj
                p_ref[s * C1:(s + 1) * C1, :] = r1f_ref[:, off:off + HWp]
        acc2 = jnp.dot(w2, p_ref[0:KK2, :],
                       preferred_element_type=jnp.float32) + b2
        conv2_ref[n] = acc2                                # hook: pre-activation
        relu2_ref[n] = jnp.maximum(acc2, 0.0)              # model output


@functools.partial(jax.jit, static_argnames=("kh", "kw"))
def small_cnn_forward(x_nchw, w1s, b1, w2s, b2, valid, *, kh, kw):
    """conv1 -> relu -> conv2 -> relu in a single fused Pallas kernel.

    Returns (conv1_out, conv2_out, relu2_out), each NCHW.
    """
    N, Cin, H, W = x_nchw.shape
    C1, C2 = w1s.shape[0], w2s.shape[0]
    Cp = w1s.shape[1] // (kh * kw)      # input channels padded to a multiple of 8
    assert C1 % 8 == 0, "conv1 out-channels must be a multiple of 8 (sublane-aligned stacking)"
    pad_h, pad_w = (kh - 1) // 2, (kw - 1) // 2
    Wp = W + 2 * pad_w
    Hp = H + 2 * pad_h
    HWp = H * Wp
    # flattened length needed by the largest in-kernel shift
    need = (kh - 1) * Wp + (kw - 1) + HWp
    extra_rows = max(0, -(-(need - Hp * Wp) // Wp))
    Lp = (Hp + extra_rows) * Wp

    # --- single input-prep op: channel pad to Cp + spatial zero-pad (+ extra
    #     bottom rows for the largest shift); the flatten that follows is free.
    xf = jnp.pad(x_nchw.astype(jnp.float32),
                 ((0, 0), (0, Cp - Cin), (pad_h, pad_h + extra_rows), (pad_w, pad_w)))
    xf = xf.reshape(N, Cp, Lp)

    # Batch block per grid step: the whole batch for small N (largest divisor
    # of N that is <= 8 otherwise, so large batches still pipeline and split
    # across the two TensorCores on v7x).
    NB = max(d for d in range(1, min(N, 8) + 1) if N % d == 0)
    grid = (N // NB,)

    kernel = functools.partial(
        _fused_two_layer_conv_kernel,
        NB=NB, H=H, Wp=Wp, Cp=Cp, C1=C1, kh=kh, kw=kw, Lp=Lp)

    conv1_f, conv2_f, relu2_f = pl.pallas_call(
        kernel,
        out_shape=(jax.ShapeDtypeStruct((N, C1, HWp), jnp.float32),
                   jax.ShapeDtypeStruct((N, C2, HWp), jnp.float32),
                   jax.ShapeDtypeStruct((N, C2, HWp), jnp.float32)),
        grid=grid,
        in_specs=[
            pl.BlockSpec((NB, Cp, Lp), lambda g: (g, 0, 0)),
            pl.BlockSpec((C1, kh * kw * Cp), lambda g: (0, 0)),
            pl.BlockSpec((C1, 1), lambda g: (0, 0)),
            pl.BlockSpec((C2, kh * kw * C1), lambda g: (0, 0)),
            pl.BlockSpec((C2, 1), lambda g: (0, 0)),
            pl.BlockSpec((1, HWp), lambda g: (0, 0)),
        ],
        out_specs=(
            pl.BlockSpec((NB, C1, HWp), lambda g: (g, 0, 0)),
            pl.BlockSpec((NB, C2, HWp), lambda g: (g, 0, 0)),
            pl.BlockSpec((NB, C2, HWp), lambda g: (g, 0, 0)),
        ),
        scratch_shapes=[
            pltpu.VMEM((kh * kw * max(Cp, C1), HWp), jnp.float32),
            pltpu.VMEM((C1, NB * Lp), jnp.float32),
        ],
        compiler_params=pltpu.CompilerParams(
            dimension_semantics=("parallel",)),
    )(xf, w1s, b1, w2s, b2, valid)

    # channel-major flat -> NCHW: free reshape + drop the Wp-padding columns.
    conv1 = conv1_f.reshape(N, C1, H, Wp)[:, :, :, :W]
    conv2 = conv2_f.reshape(N, C2, H, Wp)[:, :, :, :W]
    relu2 = relu2_f.reshape(N, C2, H, Wp)[:, :, :, :W]
    return conv1, conv2, relu2


@functools.lru_cache(maxsize=None)
def _valid_mask(H, W, Wp):
    """1.0 where flat column t = h*Wp + w is a real output position (w < W)."""
    m = (np.arange(H * Wp) % Wp < W).astype(np.float32)
    return jnp.asarray(m.reshape(1, H * Wp))


class SmallCNN:
    """Deterministic stand-in for the wrapped torch model: conv1->relu->conv2->relu."""

    def __init__(self, key, cin=4, c1=8, c2=8, k=3):
        k1, k2, k3, k4 = jax.random.split(key, 4)
        self.params = {
            "conv1": {"w": 0.1 * jax.random.normal(k1, (c1, cin, k, k), jnp.float32),
                      "b": 0.1 * jax.random.normal(k2, (c1,), jnp.float32)},
            "conv2": {"w": 0.1 * jax.random.normal(k3, (c2, cin if False else c1, k, k), jnp.float32),
                      "b": 0.1 * jax.random.normal(k4, (c2,), jnp.float32)},
        }
        self.kh = self.kw = k
        # Pre-lay-out parameters ONCE (hoisted out of the per-call jit path):
        # OIHW -> (O, kh*kw*Cpad) stacked-K weights; input channels zero-padded
        # to a multiple of 8 so in-kernel scratch writes are sublane-aligned.
        cp = _round_up(cin, 8)
        w1p = jnp.pad(self.params["conv1"]["w"],
                      ((0, 0), (0, cp - cin), (0, 0), (0, 0)))
        self.w1s = jnp.transpose(w1p, (0, 2, 3, 1)).reshape(c1, k * k * cp).astype(jnp.float32)
        self.w2s = jnp.transpose(self.params["conv2"]["w"], (0, 2, 3, 1)
                                 ).reshape(c2, k * k * c1).astype(jnp.float32)
        self.b1c = self.params["conv1"]["b"].reshape(c1, 1).astype(jnp.float32)
        self.b2c = self.params["conv2"]["b"].reshape(c2, 1).astype(jnp.float32)

    def __call__(self, x, capture):
        """Runs the model; `capture(layer_id, output)` plays the role of forward hooks."""
        H, W = int(x.shape[2]), int(x.shape[3])
        valid = _valid_mask(H, W, W + (self.kw - 1))   # Wp = W + 2*pad_w
        conv1_out, conv2_out, relu2_out = small_cnn_forward(
            x, self.w1s, self.b1c, self.w2s, self.b2c, valid,
            kh=self.kh, kw=self.kw)
        capture("conv1", conv1_out)   # hook fires on the Conv2d module output
        capture("conv2", conv2_out)
        return relu2_out


class FeatureExtractor:
    """JAX port of the torch FeatureExtractor: wraps a model, captures layer outputs."""

    def __init__(self, model, layers):
        self.model = model
        self.layers = tuple(layers)
        self._features = {layer: jnp.empty((0,), jnp.float32) for layer in self.layers}

    def _capture(self, layer_id, output):
        if layer_id in self._features:
            self._features[layer_id] = output

    def __call__(self, x):
        # Same semantics as the torch module: forward returns model(x);
        # intermediate layer outputs land in self._features via the hooks.
        output = self.model(x, self._capture)
        return output


def _reference_conv_relu(x, w, b):
    out = lax.conv_general_dilated(
        x, w, window_strides=(1, 1), padding=((1, 1), (1, 1)),
        dimension_numbers=("NCHW", "OIHW", "NCHW"))
    out = out + b.reshape(1, -1, 1, 1)
    return out, jnp.maximum(out, 0.0)


if __name__ == "__main__":
    key = jax.random.PRNGKey(0)
    kx, km = jax.random.split(key)

    # Small input consistent with an NCHW conv model: (batch=2, C=4, H=16, W=16)
    x = jax.random.normal(kx, (2, 4, 16, 16), jnp.float32)

    model = SmallCNN(km)
    extractor = FeatureExtractor(model, layers=("conv1", "conv2"))

    out = extractor(x)
    out = jax.block_until_ready(out)
    feats = {k: jax.block_until_ready(v) for k, v in extractor._features.items()}

    # Correctness check against a pure-JAX reference of the same model.
    c1_ref, r1_ref = _reference_conv_relu(x, model.params["conv1"]["w"], model.params["conv1"]["b"])
    c2_ref, r2_ref = _reference_conv_relu(r1_ref, model.params["conv2"]["w"], model.params["conv2"]["b"])

    assert out.shape == (2, 8, 16, 16)
    assert feats["conv1"].shape == (2, 8, 16, 16)
    assert feats["conv2"].shape == (2, 8, 16, 16)
    assert jnp.allclose(feats["conv1"], c1_ref, atol=1e-4, rtol=1e-4)
    assert jnp.allclose(feats["conv2"], c2_ref, atol=1e-4, rtol=1e-4)
    assert jnp.allclose(out, r2_ref, atol=1e-4, rtol=1e-4)

    print("KERNEL_OK")
</pallas_src>

<mosaic_0001>
module attributes {stable_mosaic.version = 11 : i64} {
  func.func @_fused_two_layer_conv_kernel(%arg0: i32, %arg1: memref<2x8x342xf32, #tpu.memory_space<vmem>>, %arg2: memref<8x72xf32, #tpu.memory_space<vmem>>, %arg3: memref<8x1xf32, #tpu.memory_space<vmem>>, %arg4: memref<8x72xf32, #tpu.memory_space<vmem>>, %arg5: memref<8x1xf32, #tpu.memory_space<vmem>>, %arg6: memref<1x288xf32, #tpu.memory_space<vmem>>, %arg7: memref<2x8x288xf32, #tpu.memory_space<vmem>>, %arg8: memref<2x8x288xf32, #tpu.memory_space<vmem>>, %arg9: memref<2x8x288xf32, #tpu.memory_space<vmem>>, %arg10: memref<72x288xf32, #tpu.memory_space<vmem>>, %arg11: memref<8x684xf32, #tpu.memory_space<vmem>>) attributes {dimension_semantics = [#tpu.dimension_semantics<parallel>], iteration_bounds = array<i64: 1>, scalar_prefetch = 0 : i64, scratch_operands = 2 : i64, tpu.core_type = #tpu.core_type<tc>, window_params = [{transform_indices = @transform_0, window_bounds = array<i64: 2, 8, 342>}, {pipeline_mode = #tpu.pipeline_mode<synchronous>, transform_indices = @transform_1, window_bounds = array<i64: 8, 72>}, {pipeline_mode = #tpu.pipeline_mode<synchronous>, transform_indices = @transform_2, window_bounds = array<i64: 8, 1>}, {pipeline_mode = #tpu.pipeline_mode<synchronous>, transform_indices = @transform_3, window_bounds = array<i64: 8, 72>}, {pipeline_mode = #tpu.pipeline_mode<synchronous>, transform_indices = @transform_4, window_bounds = array<i64: 8, 1>}, {pipeline_mode = #tpu.pipeline_mode<synchronous>, transform_indices = @transform_5, window_bounds = array<i64: 1, 288>}, {transform_indices = @transform_6, window_bounds = array<i64: 2, 8, 288>}, {transform_indices = @transform_7, window_bounds = array<i64: 2, 8, 288>}, {transform_indices = @transform_8, window_bounds = array<i64: 2, 8, 288>}]} {
    %c0_i32 = arith.constant 0 : i32
    %0 = arith.cmpi eq, %arg0, %c0_i32 : i32
    %1 = arith.extui %0 : i1 to i32
    %c0_i32_0 = arith.constant 0 : i32
    %2 = arith.cmpi ne, %1, %c0_i32_0 : i32
    scf.if %2 {
      %cst_184 = arith.constant 0.000000e+00 : f32
      %146 = vector.broadcast %cst_184 : f32 to vector<8x684xf32>
      %c0_185 = arith.constant 0 : index
      %c0_186 = arith.constant 0 : index
      %147 = vector.load %arg11[%c0_185, %c0_186] : memref<8x684xf32, #tpu.memory_space<vmem>>, vector<8x684xf32>
      tpu.vector_store %arg11[%c0_185, %c0_186], %146 {strides = array<i32>} : memref<8x684xf32, #tpu.memory_space<vmem>>, vector<8x684xf32>,
    } else {
    }
    %c0 = arith.constant 0 : index
    %c0_1 = arith.constant 0 : index
    %3 = vector.load %arg6[%c0, %c0_1] : memref<1x288xf32, #tpu.memory_space<vmem>>, vector<1x288xf32>
    %c0_2 = arith.constant 0 : index
    %c0_3 = arith.constant 0 : index
    %4 = vector.load %arg2[%c0_2, %c0_3] : memref<8x72xf32, #tpu.memory_space<vmem>>, vector<8x72xf32>
    %c0_4 = arith.constant 0 : index
    %c0_5 = arith.constant 0 : index
    %5 = vector.load %arg3[%c0_4, %c0_5] : memref<8x1xf32, #tpu.memory_space<vmem>>, vector<8x1xf32>
    %c0_6 = arith.constant 0 : index
    %c0_7 = arith.constant 0 : index
    %c0_8 = arith.constant 0 : index
    %6 = vector.load %arg1[%c0_6, %c0_7, %c0_8] : memref<2x8x342xf32, #tpu.memory_space<vmem>>, vector<1x8x288xf32>
    %7 = vector.shape_cast %6 : vector<1x8x288xf32> to vector<8x288xf32>
    %c0_9 = arith.constant 0 : index
    %c0_10 = arith.constant 0 : index
    %8 = vector.load %arg10[%c0_9, %c0_10] : memref<72x288xf32, #tpu.memory_space<vmem>>, vector<8x288xf32>
    tpu.vector_store %arg10[%c0_9, %c0_10], %7 {strides = array<i32>} : memref<72x288xf32, #tpu.memory_space<vmem>>, vector<8x288xf32>,
    %c0_11 = arith.constant 0 : index
    %c0_12 = arith.constant 0 : index
    %c1 = arith.constant 1 : index
    %9 = vector.load %arg1[%c0_11, %c0_12, %c1] : memref<2x8x342xf32, #tpu.memory_space<vmem>>, vector<1x8x288xf32>
    %10 = vector.shape_cast %9 : vector<1x8x288xf32> to vector<8x288xf32>
    %c8 = arith.constant 8 : index
    %c0_13 = arith.constant 0 : index
    %11 = vector.load %arg10[%c8, %c0_13] : memref<72x288xf32, #tpu.memory_space<vmem>>, vector<8x288xf32>
    tpu.vector_store %arg10[%c8, %c0_13], %10 {strides = array<i32>} : memref<72x288xf32, #tpu.memory_space<vmem>>, vector<8x288xf32>,
    %c0_14 = arith.constant 0 : index
    %c0_15 = arith.constant 0 : index
    %c2 = arith.constant 2 : index
    %12 = vector.load %arg1[%c0_14, %c0_15, %c2] : memref<2x8x342xf32, #tpu.memory_space<vmem>>, vector<1x8x288xf32>
    %13 = vector.shape_cast %12 : vector<1x8x288xf32> to vector<8x288xf32>
    %c16 = arith.constant 16 : index
    %c0_16 = arith.constant 0 : index
    %14 = vector.load %arg10[%c16, %c0_16] : memref<72x288xf32, #tpu.memory_space<vmem>>, vector<8x288xf32>
    tpu.vector_store %arg10[%c16, %c0_16], %13 {strides = array<i32>} : memref<72x288xf32, #tpu.memory_space<vmem>>, vector<8x288xf32>,
    %c0_17 = arith.constant 0 : index
    %c0_18 = arith.constant 0 : index
    %c18 = arith.constant 18 : index
    %15 = vector.load %arg1[%c0_17, %c0_18, %c18] : memref<2x8x342xf32, #tpu.memory_space<vmem>>, vector<1x8x288xf32>
    %16 = vector.shape_cast %15 : vector<1x8x288xf32> to vector<8x288xf32>
    %c24 = arith.constant 24 : index
    %c0_19 = arith.constant 0 : index
    %17 = vector.load %arg10[%c24, %c0_19] : memref<72x288xf32, #tpu.memory_space<vmem>>, vector<8x288xf32>
    tpu.vector_store %arg10[%c24, %c0_19], %16 {strides = array<i32>} : memref<72x288xf32, #tpu.memory_space<vmem>>, vector<8x288xf32>,
    %c0_20 = arith.constant 0 : index
    %c0_21 = arith.constant 0 : index
    %c19 = arith.constant 19 : index
    %18 = vector.load %arg1[%c0_20, %c0_21, %c19] : memref<2x8x342xf32, #tpu.memory_space<vmem>>, vector<1x8x288xf32>
    %19 = vector.shape_cast %18 : vector<1x8x288xf32> to vector<8x288xf32>
    %c32 = arith.constant 32 : index
    %c0_22 = arith.constant 0 : index
    %20 = vector.load %arg10[%c32, %c0_22] : memref<72x288xf32, #tpu.memory_space<vmem>>, vector<8x288xf32>
    tpu.vector_store %arg10[%c32, %c0_22], %19 {strides = array<i32>} : memref<72x288xf32, #tpu.memory_space<vmem>>, vector<8x288xf32>,
    %c0_23 = arith.constant 0 : index
    %c0_24 = arith.constant 0 : index
    %c20 = arith.constant 20 : index
    %21 = vector.load %arg1[%c0_23, %c0_24, %c20] : memref<2x8x342xf32, #tpu.memory_space<vmem>>, vector<1x8x288xf32>
    %22 = vector.shape_cast %21 : vector<1x8x288xf32> to vector<8x288xf32>
    %c40 = arith.constant 40 : index
    %c0_25 = arith.constant 0 : index
    %23 = vector.load %arg10[%c40, %c0_25] : memref<72x288xf32, #tpu.memory_space<vmem>>, vector<8x288xf32>
    tpu.vector_store %arg10[%c40, %c0_25], %22 {strides = array<i32>} : memref<72x288xf32, #tpu.memory_space<vmem>>, vector<8x288xf32>,
    %c0_26 = arith.constant 0 : index
    %c0_27 = arith.constant 0 : index
    %c36 = arith.constant 36 : index
    %24 = vector.load %arg1[%c0_26, %c0_27, %c36] : memref<2x8x342xf32, #tpu.memory_space<vmem>>, vector<1x8x288xf32>
    %25 = vector.shape_cast %24 : vector<1x8x288xf32> to vector<8x288xf32>
    %c48 = arith.constant 48 : index
    %c0_28 = arith.constant 0 : index
    %26 = vector.load %arg10[%c48, %c0_28] : memref<72x288xf32, #tpu.memory_space<vmem>>, vector<8x288xf32>
    tpu.vector_store %arg10[%c48, %c0_28], %25 {strides = array<i32>} : memref<72x288xf32, #tpu.memory_space<vmem>>, vector<8x288xf32>,
    %c0_29 = arith.constant 0 : index
    %c0_30 = arith.constant 0 : index
    %c37 = arith.constant 37 : index
    %27 = vector.load %arg1[%c0_29, %c0_30, %c37] : memref<2x8x342xf32, #tpu.memory_space<vmem>>, vector<1x8x288xf32>
    %28 = vector.shape_cast %27 : vector<1x8x288xf32> to vector<8x288xf32>
    %c56 = arith.constant 56 : index
    %c0_31 = arith.constant 0 : index
    %29 = vector.load %arg10[%c56, %c0_31] : memref<72x288xf32, #tpu.memory_space<vmem>>, vector<8x288xf32>
    tpu.vector_store %arg10[%c56, %c0_31], %28 {strides = array<i32>} : memref<72x288xf32, #tpu.memory_space<vmem>>, vector<8x288xf32>,
    %c0_32 = arith.constant 0 : index
    %c0_33 = arith.constant 0 : index
    %c38 = arith.constant 38 : index
    %30 = vector.load %arg1[%c0_32, %c0_33, %c38] : memref<2x8x342xf32, #tpu.memory_space<vmem>>, vector<1x8x288xf32>
    %31 = vector.shape_cast %30 : vector<1x8x288xf32> to vector<8x288xf32>
    %c64 = arith.constant 64 : index
    %c0_34 = arith.constant 0 : index
    %32 = vector.load %arg10[%c64, %c0_34] : memref<72x288xf32, #tpu.memory_space<vmem>>, vector<8x288xf32>
    tpu.vector_store %arg10[%c64, %c0_34], %31 {strides = array<i32>} : memref<72x288xf32, #tpu.memory_space<vmem>>, vector<8x288xf32>,
    %c0_35 = arith.constant 0 : index
    %c0_36 = arith.constant 0 : index
    %33 = vector.load %arg10[%c0_35, %c0_36] : memref<72x288xf32, #tpu.memory_space<vmem>>, vector<72x288xf32>
    %cst = arith.constant dense<0.000000e+00> : vector<8x288xf32>
    %34 = tpu.matmul %4, %33, %cst {dimension_numbers = #tpu.dot_dimension_numbers<[1], [0], [0], [1], [0, 0, 1, 1], [], []>} : vector<8x72xf32>, vector<72x288xf32>, vector<8x288xf32> -> vector<8x288xf32>
    %35 = vector.broadcast %5 : vector<8x1xf32> to vector<8x288xf32>
    %36 = arith.addf %34, %35 : vector<8x288xf32>
    %c0_37 = arith.constant 0 : index
    %c0_38 = arith.constant 0 : index
    %c0_39 = arith.constant 0 : index
    %37 = vector.load %arg7[%c0_37, %c0_38, %c0_39] : memref<2x8x288xf32, #tpu.memory_space<vmem>>, vector<1x8x288xf32>
    %38 = vector.shape_cast %37 : vector<1x8x288xf32> to vector<8x288xf32>
    %39 = vector.shape_cast %36 : vector<8x288xf32> to vector<1x8x288xf32>
    tpu.vector_store %arg7[%c0_37, %c0_38, %c0_39], %39 {strides = array<i32>} : memref<2x8x288xf32, #tpu.memory_space<vmem>>, vector<1x8x288xf32>,
    %cst_40 = arith.constant 0.000000e+00 : f32
    %40 = vector.broadcast %cst_40 : f32 to vector<8x288xf32>
    %41 = arith.maximumf %36, %40 : vector<8x288xf32>
    %42 = vector.broadcast %3 : vector<1x288xf32> to vector<8x288xf32>
    %43 = arith.mulf %41, %42 : vector<8x288xf32>
    %c0_41 = arith.constant 0 : index
    %c19_42 = arith.constant 19 : index
    %44 = vector.load %arg11[%c0_41, %c19_42] : memref<8x684xf32, #tpu.memory_space<vmem>>, vector<8x288xf32>
    tpu.vector_store %arg11[%c0_41, %c19_42], %43 {strides = array<i32>} : memref<8x684xf32, #tpu.memory_space<vmem>>, vector<8x288xf32>,
    %c1_43 = arith.constant 1 : index
    %c0_44 = arith.constant 0 : index
    %c0_45 = arith.constant 0 : index
    %45 = vector.load %arg1[%c1_43, %c0_44, %c0_45] : memref<2x8x342xf32, #tpu.memory_space<vmem>>, vector<1x8x288xf32>
    %46 = vector.shape_cast %45 : vector<1x8x288xf32> to vector<8x288xf32>
    %c0_46 = arith.constant 0 : index
    %c0_47 = arith.constant 0 : index
    %47 = vector.load %arg10[%c0_46, %c0_47] : memref<72x288xf32, #tpu.memory_space<vmem>>, vector<8x288xf32>
    tpu.vector_store %arg10[%c0_46, %c0_47], %46 {strides = array<i32>} : memref<72x288xf32, #tpu.memory_space<vmem>>, vector<8x288xf32>,
    %c1_48 = arith.constant 1 : index
    %c0_49 = arith.constant 0 : index
    %c1_50 = arith.constant 1 : index
    %48 = vector.load %arg1[%c1_48, %c0_49, %c1_50] : memref<2x8x342xf32, #tpu.memory_space<vmem>>, vector<1x8x288xf32>
    %49 = vector.shape_cast %48 : vector<1x8x288xf32> to vector<8x288xf32>
    %c8_51 = arith.constant 8 : index
    %c0_52 = arith.constant 0 : index
    %50 = vector.load %arg10[%c8_51, %c0_52] : memref<72x288xf32, #tpu.memory_space<vmem>>, vector<8x288xf32>
    tpu.vector_store %arg10[%c8_51, %c0_52], %49 {strides = array<i32>} : memref<72x288xf32, #tpu.memory_space<vmem>>, vector<8x288xf32>,
    %c1_53 = arith.constant 1 : index
    %c0_54 = arith.constant 0 : index
    %c2_55 = arith.constant 2 : index
    %51 = vector.load %arg1[%c1_53, %c0_54, %c2_55] : memref<2x8x342xf32, #tpu.memory_space<vmem>>, vector<1x8x288xf32>
    %52 = vector.shape_cast %51 : vector<1x8x288xf32> to vector<8x288xf32>
    %c16_56 = arith.constant 16 : index
    %c0_57 = arith.constant 0 : index
    %53 = vector.load %arg10[%c16_56, %c0_57] : memref<72x288xf32, #tpu.memory_space<vmem>>, vector<8x288xf32>
    tpu.vector_store %arg10[%c16_56, %c0_57], %52 {strides = array<i32>} : memref<72x288xf32, #tpu.memory_space<vmem>>, vector<8x288xf32>,
    %c1_58 = arith.constant 1 : index
    %c0_59 = arith.constant 0 : index
    %c18_60 = arith.constant 18 : index
    %54 = vector.load %arg1[%c1_58, %c0_59, %c18_60] : memref<2x8x342xf32, #tpu.memory_space<vmem>>, vector<1x8x288xf32>
    %55 = vector.shape_cast %54 : vector<1x8x288xf32> to vector<8x288xf32>
    %c24_61 = arith.constant 24 : index
    %c0_62 = arith.constant 0 : index
    %56 = vector.load %arg10[%c24_61, %c0_62] : memref<72x288xf32, #tpu.memory_space<vmem>>, vector<8x288xf32>
    tpu.vector_store %arg10[%c24_61, %c0_62], %55 {strides = array<i32>} : memref<72x288xf32, #tpu.memory_space<vmem>>, vector<8x288xf32>,
    %c1_63 = arith.constant 1 : index
    %c0_64 = arith.constant 0 : index
    %c19_65 = arith.constant 19 : index
    %57 = vector.load %arg1[%c1_63, %c0_64, %c19_65] : memref<2x8x342xf32, #tpu.memory_space<vmem>>, vector<1x8x288xf32>
    %58 = vector.shape_cast %57 : vector<1x8x288xf32> to vector<8x288xf32>
    %c32_66 = arith.constant 32 : index
    %c0_67 = arith.constant 0 : index
    %59 = vector.load %arg10[%c32_66, %c0_67] : memref<72x288xf32, #tpu.memory_space<vmem>>, vector<8x288xf32>
    tpu.vector_store %arg10[%c32_66, %c0_67], %58 {strides = array<i32>} : memref<72x288xf32, #tpu.memory_space<vmem>>, vector<8x288xf32>,
    %c1_68 = arith.constant 1 : index
    %c0_69 = arith.constant 0 : index
    %c20_70 = arith.constant 20 : index
    %60 = vector.load %arg1[%c1_68, %c0_69, %c20_70] : memref<2x8x342xf32, #tpu.memory_space<vmem>>, vector<1x8x288xf32>
    %61 = vector.shape_cast %60 : vector<1x8x288xf32> to vector<8x288xf32>
    %c40_71 = arith.constant 40 : index
    %c0_72 = arith.constant 0 : index
    %62 = vector.load %arg10[%c40_71, %c0_72] : memref<72x288xf32, #tpu.memory_space<vmem>>, vector<8x288xf32>
    tpu.vector_store %arg10[%c40_71, %c0_72], %61 {strides = array<i32>} : memref<72x288xf32, #tpu.memory_space<vmem>>, vector<8x288xf32>,
    %c1_73 = arith.constant 1 : index
    %c0_74 = arith.constant 0 : index
    %c36_75 = arith.constant 36 : index
    %63 = vector.load %arg1[%c1_73, %c0_74, %c36_75] : memref<2x8x342xf32, #tpu.memory_space<vmem>>, vector<1x8x288xf32>
    %64 = vector.shape_cast %63 : vector<1x8x288xf32> to vector<8x288xf32>
    %c48_76 = arith.constant 48 : index
    %c0_77 = arith.constant 0 : index
    %65 = vector.load %arg10[%c48_76, %c0_77] : memref<72x288xf32, #tpu.memory_space<vmem>>, vector<8x288xf32>
    tpu.vector_store %arg10[%c48_76, %c0_77], %64 {strides = array<i32>} : memref<72x288xf32, #tpu.memory_space<vmem>>, vector<8x288xf32>,
    %c1_78 = arith.constant 1 : index
    %c0_79 = arith.constant 0 : index
    %c37_80 = arith.constant 37 : index
    %66 = vector.load %arg1[%c1_78, %c0_79, %c37_80] : memref<2x8x342xf32, #tpu.memory_space<vmem>>, vector<1x8x288xf32>
    %67 = vector.shape_cast %66 : vector<1x8x288xf32> to vector<8x288xf32>
    %c56_81 = arith.constant 56 : index
    %c0_82 = arith.constant 0 : index
    %68 = vector.load %arg10[%c56_81, %c0_82] : memref<72x288xf32, #tpu.memory_space<vmem>>, vector<8x288xf32>
    tpu.vector_store %arg10[%c56_81, %c0_82], %67 {strides = array<i32>} : memref<72x288xf32, #tpu.memory_space<vmem>>, vector<8x288xf32>,
    %c1_83 = arith.constant 1 : index
    %c0_84 = arith.constant 0 : index
    %c38_85 = arith.constant 38 : index
    %69 = vector.load %arg1[%c1_83, %c0_84, %c38_85] : memref<2x8x342xf32, #tpu.memory_space<vmem>>, vector<1x8x288xf32>
    %70 = vector.shape_cast %69 : vector<1x8x288xf32> to vector<8x288xf32>
    %c64_86 = arith.constant 64 : index
    %c0_87 = arith.constant 0 : index
    %71 = vector.load %arg10[%c64_86, %c0_87] : memref<72x288xf32, #tpu.memory_space<vmem>>, vector<8x288xf32>
    tpu.vector_store %arg10[%c64_86, %c0_87], %70 {strides = array<i32>} : memref<72x288xf32, #tpu.memory_space<vmem>>, vector<8x288xf32>,
    %c0_88 = arith.constant 0 : index
    %c0_89 = arith.constant 0 : index
    %72 = vector.load %arg10[%c0_88, %c0_89] : memref<72x288xf32, #tpu.memory_space<vmem>>, vector<72x288xf32>
    %cst_90 = arith.constant dense<0.000000e+00> : vector<8x288xf32>
    %73 = tpu.matmul %4, %72, %cst_90 {dimension_numbers = #tpu.dot_dimension_numbers<[1], [0], [0], [1], [0, 0, 1, 1], [], []>} : vector<8x72xf32>, vector<72x288xf32>, vector<8x288xf32> -> vector<8x288xf32>
    %74 = vector.broadcast %5 : vector<8x1xf32> to vector<8x288xf32>
    %75 = arith.addf %73, %74 : vector<8x288xf32>
    %c1_91 = arith.constant 1 : index
    %c0_92 = arith.constant 0 : index
    %c0_93 = arith.constant 0 : index
    %76 = vector.load %arg7[%c1_91, %c0_92, %c0_93] : memref<2x8x288xf32, #tpu.memory_space<vmem>>, vector<1x8x288xf32>
    %77 = vector.shape_cast %76 : vector<1x8x288xf32> to vector<8x288xf32>
    %78 = vector.shape_cast %75 : vector<8x288xf32> to vector<1x8x288xf32>
    tpu.vector_store %arg7[%c1_91, %c0_92, %c0_93], %78 {strides = array<i32>} : memref<2x8x288xf32, #tpu.memory_space<vmem>>, vector<1x8x288xf32>,
    %cst_94 = arith.constant 0.000000e+00 : f32
    %79 = vector.broadcast %cst_94 : f32 to vector<8x288xf32>
    %80 = arith.maximumf %75, %79 : vector<8x288xf32>
    %81 = vector.broadcast %3 : vector<1x288xf32> to vector<8x288xf32>
    %82 = arith.mulf %80, %81 : vector<8x288xf32>
    %c0_95 = arith.constant 0 : index
    %c361 = arith.constant 361 : index
    %83 = vector.load %arg11[%c0_95, %c361] : memref<8x684xf32, #tpu.memory_space<vmem>>, vector<8x288xf32>
    tpu.vector_store %arg11[%c0_95, %c361], %82 {strides = array<i32>} : memref<8x684xf32, #tpu.memory_space<vmem>>, vector<8x288xf32>,
    %c0_96 = arith.constant 0 : index
    %c0_97 = arith.constant 0 : index
    %84 = vector.load %arg4[%c0_96, %c0_97] : memref<8x72xf32, #tpu.memory_space<vmem>>, vector<8x72xf32>
    %c0_98 = arith.constant 0 : index
    %c0_99 = arith.constant 0 : index
    %85 = vector.load %arg5[%c0_98, %c0_99] : memref<8x1xf32, #tpu.memory_space<vmem>>, vector<8x1xf32>
    %c0_100 = arith.constant 0 : index
    %c0_101 = arith.constant 0 : index
    %86 = vector.load %arg11[%c0_100, %c0_101] : memref<8x684xf32, #tpu.memory_space<vmem>>, vector<8x288xf32>
    %c0_102 = arith.constant 0 : index
    %c0_103 = arith.constant 0 : index
    %87 = vector.load %arg10[%c0_102, %c0_103] : memref<72x288xf32, #tpu.memory_space<vmem>>, vector<8x288xf32>
    tpu.vector_store %arg10[%c0_102, %c0_103], %86 {strides = array<i32>} : memref<72x288xf32, #tpu.memory_space<vmem>>, vector<8x288xf32>,
    %c0_104 = arith.constant 0 : index
    %c1_105 = arith.constant 1 : index
    %88 = vector.load %arg11[%c0_104, %c1_105] : memref<8x684xf32, #tpu.memory_space<vmem>>, vector<8x288xf32>
    %c8_106 = arith.constant 8 : index
    %c0_107 = arith.constant 0 : index
    %89 = vector.load %arg10[%c8_106, %c0_107] : memref<72x288xf32, #tpu.memory_space<vmem>>, vector<8x288xf32>
    tpu.vector_store %arg10[%c8_106, %c0_107], %88 {strides = array<i32>} : memref<72x288xf32, #tpu.memory_space<vmem>>, vector<8x288xf32>,
    %c0_108 = arith.constant 0 : index
    %c2_109 = arith.constant 2 : index
    %90 = vector.load %arg11[%c0_108, %c2_109] : memref<8x684xf32, #tpu.memory_space<vmem>>, vector<8x288xf32>
    %c16_110 = arith.constant 16 : index
    %c0_111 = arith.constant 0 : index
    %91 = vector.load %arg10[%c16_110, %c0_111] : memref<72x288xf32, #tpu.memory_space<vmem>>, vector<8x288xf32>
    tpu.vector_store %arg10[%c16_110, %c0_111], %90 {strides = array<i32>} : memref<72x288xf32, #tpu.memory_space<vmem>>, vector<8x288xf32>,
    %c0_112 = arith.constant 0 : index
    %c18_113 = arith.constant 18 : index
    %92 = vector.load %arg11[%c0_112, %c18_113] : memref<8x684xf32, #tpu.memory_space<vmem>>, vector<8x288xf32>
    %c24_114 = arith.constant 24 : index
    %c0_115 = arith.constant 0 : index
    %93 = vector.load %arg10[%c24_114, %c0_115] : memref<72x288xf32, #tpu.memory_space<vmem>>, vector<8x288xf32>
    tpu.vector_store %arg10[%c24_114, %c0_115], %92 {strides = array<i32>} : memref<72x288xf32, #tpu.memory_space<vmem>>, vector<8x288xf32>,
    %c0_116 = arith.constant 0 : index
    %c19_117 = arith.constant 19 : index
    %94 = vector.load %arg11[%c0_116, %c19_117] : memref<8x684xf32, #tpu.memory_space<vmem>>, vector<8x288xf32>
    %c32_118 = arith.constant 32 : index
    %c0_119 = arith.constant 0 : index
    %95 = vector.load %arg10[%c32_118, %c0_119] : memref<72x288xf32, #tpu.memory_space<vmem>>, vector<8x288xf32>
    tpu.vector_store %arg10[%c32_118, %c0_119], %94 {strides = array<i32>} : memref<72x288xf32, #tpu.memory_space<vmem>>, vector<8x288xf32>,
    %c0_120 = arith.constant 0 : index
    %c20_121 = arith.constant 20 : index
    %96 = vector.load %arg11[%c0_120, %c20_121] : memref<8x684xf32, #tpu.memory_space<vmem>>, vector<8x288xf32>
    %c40_122 = arith.constant 40 : index
    %c0_123 = arith.constant 0 : index
    %97 = vector.load %arg10[%c40_122, %c0_123] : memref<72x288xf32, #tpu.memory_space<vmem>>, vector<8x288xf32>
    tpu.vector_store %arg10[%c40_122, %c0_123], %96 {strides = array<i32>} : memref<72x288xf32, #tpu.memory_space<vmem>>, vector<8x288xf32>,
    %c0_124 = arith.constant 0 : index
    %c36_125 = arith.constant 36 : index
    %98 = vector.load %arg11[%c0_124, %c36_125] : memref<8x684xf32, #tpu.memory_space<vmem>>, vector<8x288xf32>
    %c48_126 = arith.constant 48 : index
    %c0_127 = arith.constant 0 : index
    %99 = vector.load %arg10[%c48_126, %c0_127] : memref<72x288xf32, #tpu.memory_space<vmem>>, vector<8x288xf32>
    tpu.vector_store %arg10[%c48_126, %c0_127], %98 {strides = array<i32>} : memref<72x288xf32, #tpu.memory_space<vmem>>, vector<8x288xf32>,
    %c0_128 = arith.constant 0 : index
    %c37_129 = arith.constant 37 : index
    %100 = vector.load %arg11[%c0_128, %c37_129] : memref<8x684xf32, #tpu.memory_space<vmem>>, vector<8x288xf32>
    %c56_130 = arith.constant 56 : index
    %c0_131 = arith.constant 0 : index
    %101 = vector.load %arg10[%c56_130, %c0_131] : memref<72x288xf32, #tpu.memory_space<vmem>>, vector<8x288xf32>
    tpu.vector_store %arg10[%c56_130, %c0_131], %100 {strides = array<i32>} : memref<72x288xf32, #tpu.memory_space<vmem>>, vector<8x288xf32>,
    %c0_132 = arith.constant 0 : index
    %c38_133 = arith.constant 38 : index
    %102 = vector.load %arg11[%c0_132, %c38_133] : memref<8x684xf32, #tpu.memory_space<vmem>>, vector<8x288xf32>
    %c64_134 = arith.constant 64 : index
    %c0_135 = arith.constant 0 : index
    %103 = vector.load %arg10[%c64_134, %c0_135] : memref<72x288xf32, #tpu.memory_space<vmem>>, vector<8x288xf32>
    tpu.vector_store %arg10[%c64_134, %c0_135], %102 {strides = array<i32>} : memref<72x288xf32, #tpu.memory_space<vmem>>, vector<8x288xf32>,
    %c0_136 = arith.constant 0 : index
    %c0_137 = arith.constant 0 : index
    %104 = vector.load %arg10[%c0_136, %c0_137] : memref<72x288xf32, #tpu.memory_space<vmem>>, vector<72x288xf32>
    %cst_138 = arith.constant dense<0.000000e+00> : vector<8x288xf32>
    %105 = tpu.matmul %84, %104, %cst_138 {dimension_numbers = #tpu.dot_dimension_numbers<[1], [0], [0], [1], [0, 0, 1, 1], [], []>} : vector<8x72xf32>, vector<72x288xf32>, vector<8x288xf32> -> vector<8x288xf32>
    %106 = vector.broadcast %85 : vector<8x1xf32> to vector<8x288xf32>
    %107 = arith.addf %105, %106 : vector<8x288xf32>
    %c0_139 = arith.constant 0 : index
    %c0_140 = arith.constant 0 : index
    %c0_141 = arith.constant 0 : index
    %108 = vector.load %arg8[%c0_139, %c0_140, %c0_141] : memref<2x8x288xf32, #tpu.memory_space<vmem>>, vector<1x8x288xf32>
    %109 = vector.shape_cast %108 : vector<1x8x288xf32> to vector<8x288xf32>
    %110 = vector.shape_cast %107 : vector<8x288xf32> to vector<1x8x288xf32>
    tpu.vector_store %arg8[%c0_139, %c0_140, %c0_141], %110 {strides = array<i32>} : memref<2x8x288xf32, #tpu.memory_space<vmem>>, vector<1x8x288xf32>,
    %cst_142 = arith.constant 0.000000e+00 : f32
    %111 = vector.broadcast %cst_142 : f32 to vector<8x288xf32>
    %112 = arith.maximumf %107, %111 : vector<8x288xf32>
    %c0_143 = arith.constant 0 : index
    %c0_144 = arith.constant 0 : index
    %c0_145 = arith.constant 0 : index
    %113 = vector.load %arg9[%c0_143, %c0_144, %c0_145] : memref<2x8x288xf32, #tpu.memory_space<vmem>>, vector<1x8x288xf32>
    %114 = vector.shape_cast %113 : vector<1x8x288xf32> to vector<8x288xf32>
    %115 = vector.shape_cast %112 : vector<8x288xf32> to vector<1x8x288xf32>
    tpu.vector_store %arg9[%c0_143, %c0_144, %c0_145], %115 {strides = array<i32>} : memref<2x8x288xf32, #tpu.memory_space<vmem>>, vector<1x8x288xf32>,
    %c0_146 = arith.constant 0 : index
    %c342 = arith.constant 342 : index
    %116 = vector.load %arg11[%c0_146, %c342] : memref<8x684xf32, #tpu.memory_space<vmem>>, vector<8x288xf32>
    %c0_147 = arith.constant 0 : index
    %c0_148 = arith.constant 0 : index
    %117 = vector.load %arg10[%c0_147, %c0_148] : memref<72x288xf32, #tpu.memory_space<vmem>>, vector<8x288xf32>
    tpu.vector_store %arg10[%c0_147, %c0_148], %116 {strides = array<i32>} : memref<72x288xf32, #tpu.memory_space<vmem>>, vector<8x288xf32>,
    %c0_149 = arith.constant 0 : index
    %c343 = arith.constant 343 : index
    %118 = vector.load %arg11[%c0_149, %c343] : memref<8x684xf32, #tpu.memory_space<vmem>>, vector<8x288xf32>
    %c8_150 = arith.constant 8 : index
    %c0_151 = arith.constant 0 : index
    %119 = vector.load %arg10[%c8_150, %c0_151] : memref<72x288xf32, #tpu.memory_space<vmem>>, vector<8x288xf32>
    tpu.vector_store %arg10[%c8_150, %c0_151], %118 {strides = array<i32>} : memref<72x288xf32, #tpu.memory_space<vmem>>, vector<8x288xf32>,
    %c0_152 = arith.constant 0 : index
    %c344 = arith.constant 344 : index
    %120 = vector.load %arg11[%c0_152, %c344] : memref<8x684xf32, #tpu.memory_space<vmem>>, vector<8x288xf32>
    %c16_153 = arith.constant 16 : index
    %c0_154 = arith.constant 0 : index
    %121 = vector.load %arg10[%c16_153, %c0_154] : memref<72x288xf32, #tpu.memory_space<vmem>>, vector<8x288xf32>
    tpu.vector_store %arg10[%c16_153, %c0_154], %120 {strides = array<i32>} : memref<72x288xf32, #tpu.memory_space<vmem>>, vector<8x288xf32>,
    %c0_155 = arith.constant 0 : index
    %c360 = arith.constant 360 : index
    %122 = vector.load %arg11[%c0_155, %c360] : memref<8x684xf32, #tpu.memory_space<vmem>>, vector<8x288xf32>
    %c24_156 = arith.constant 24 : index
    %c0_157 = arith.constant 0 : index
    %123 = vector.load %arg10[%c24_156, %c0_157] : memref<72x288xf32, #tpu.memory_space<vmem>>, vector<8x288xf32>
    tpu.vector_store %arg10[%c24_156, %c0_157], %122 {strides = array<i32>} : memref<72x288xf32, #tpu.memory_space<vmem>>, vector<8x288xf32>,
    %c0_158 = arith.constant 0 : index
    %c361_159 = arith.constant 361 : index
    %124 = vector.load %arg11[%c0_158, %c361_159] : memref<8x684xf32, #tpu.memory_space<vmem>>, vector<8x288xf32>
    %c32_160 = arith.constant 32 : index
    %c0_161 = arith.constant 0 : index
    %125 = vector.load %arg10[%c32_160, %c0_161] : memref<72x288xf32, #tpu.memory_space<vmem>>, vector<8x288xf32>
    tpu.vector_store %arg10[%c32_160, %c0_161], %124 {strides = array<i32>} : memref<72x288xf32, #tpu.memory_space<vmem>>, vector<8x288xf32>,
    %c0_162 = arith.constant 0 : index
    %c362 = arith.constant 362 : index
    %126 = vector.load %arg11[%c0_162, %c362] : memref<8x684xf32, #tpu.memory_space<vmem>>, vector<8x288xf32>
    %c40_163 = arith.constant 40 : index
    %c0_164 = arith.constant 0 : index
    %127 = vector.load %arg10[%c40_163, %c0_164] : memref<72x288xf32, #tpu.memory_space<vmem>>, vector<8x288xf32>
    tpu.vector_store %arg10[%c40_163, %c0_164], %126 {strides = array<i32>} : memref<72x288xf32, #tpu.memory_space<vmem>>, vector<8x288xf32>,
    %c0_165 = arith.constant 0 : index
    %c378 = arith.constant 378 : index
    %128 = vector.load %arg11[%c0_165, %c378] : memref<8x684xf32, #tpu.memory_space<vmem>>, vector<8x288xf32>
    %c48_166 = arith.constant 48 : index
    %c0_167 = arith.constant 0 : index
    %129 = vector.load %arg10[%c48_166, %c0_167] : memref<72x288xf32, #tpu.memory_space<vmem>>, vector<8x288xf32>
    tpu.vector_store %arg10[%c48_166, %c0_167], %128 {strides = array<i32>} : memref<72x288xf32, #tpu.memory_space<vmem>>, vector<8x288xf32>,
    %c0_168 = arith.constant 0 : index
    %c379 = arith.constant 379 : index
    %130 = vector.load %arg11[%c0_168, %c379] : memref<8x684xf32, #tpu.memory_space<vmem>>, vector<8x288xf32>
    %c56_169 = arith.constant 56 : index
    %c0_170 = arith.constant 0 : index
    %131 = vector.load %arg10[%c56_169, %c0_170] : memref<72x288xf32, #tpu.memory_space<vmem>>, vector<8x288xf32>
    tpu.vector_store %arg10[%c56_169, %c0_170], %130 {strides = array<i32>} : memref<72x288xf32, #tpu.memory_space<vmem>>, vector<8x288xf32>,
    %c0_171 = arith.constant 0 : index
    %c380 = arith.constant 380 : index
    %132 = vector.load %arg11[%c0_171, %c380] : memref<8x684xf32, #tpu.memory_space<vmem>>, vector<8x288xf32>
    %c64_172 = arith.constant 64 : index
    %c0_173 = arith.constant 0 : index
    %133 = vector.load %arg10[%c64_172, %c0_173] : memref<72x288xf32, #tpu.memory_space<vmem>>, vector<8x288xf32>
    tpu.vector_store %arg10[%c64_172, %c0_173], %132 {strides = array<i32>} : memref<72x288xf32, #tpu.memory_space<vmem>>, vector<8x288xf32>,
    %c0_174 = arith.constant 0 : index
    %c0_175 = arith.constant 0 : index
    %134 = vector.load %arg10[%c0_174, %c0_175] : memref<72x288xf32, #tpu.memory_space<vmem>>, vector<72x288xf32>
    %cst_176 = arith.constant dense<0.000000e+00> : vector<8x288xf32>
    %135 = tpu.matmul %84, %134, %cst_176 {dimension_numbers = #tpu.dot_dimension_numbers<[1], [0], [0], [1], [0, 0, 1, 1], [], []>} : vector<8x72xf32>, vector<72x288xf32>, vector<8x288xf32> -> vector<8x288xf32>
    %136 = vector.broadcast %85 : vector<8x1xf32> to vector<8x288xf32>
    %137 = arith.addf %135, %136 : vector<8x288xf32>
    %c1_177 = arith.constant 1 : index
    %c0_178 = arith.constant 0 : index
    %c0_179 = arith.constant 0 : index
    %138 = vector.load %arg8[%c1_177, %c0_178, %c0_179] : memref<2x8x288xf32, #tpu.memory_space<vmem>>, vector<1x8x288xf32>
    %139 = vector.shape_cast %138 : vector<1x8x288xf32> to vector<8x288xf32>
    %140 = vector.shape_cast %137 : vector<8x288xf32> to vector<1x8x288xf32>
    tpu.vector_store %arg8[%c1_177, %c0_178, %c0_179], %140 {strides = array<i32>} : memref<2x8x288xf32, #tpu.memory_space<vmem>>, vector<1x8x288xf32>,
    %cst_180 = arith.constant 0.000000e+00 : f32
    %141 = vector.broadcast %cst_180 : f32 to vector<8x288xf32>
    %142 = arith.maximumf %137, %141 : vector<8x288xf32>
    %c1_181 = arith.constant 1 : index
    %c0_182 = arith.constant 0 : index
    %c0_183 = arith.constant 0 : index
    %143 = vector.load %arg9[%c1_181, %c0_182, %c0_183] : memref<2x8x288xf32, #tpu.memory_space<vmem>>, vector<1x8x288xf32>
    %144 = vector.shape_cast %143 : vector<1x8x288xf32> to vector<8x288xf32>
    %145 = vector.shape_cast %142 : vector<8x288xf32> to vector<1x8x288xf32>
    tpu.vector_store %arg9[%c1_181, %c0_182, %c0_183], %145 {strides = array<i32>} : memref<2x8x288xf32, #tpu.memory_space<vmem>>, vector<1x8x288xf32>,
    return
  }
  func.func @transform_0(%arg0: i32) -> (i32, i32, i32) {
    %c0_i32 = arith.constant 0 : i32
    %c0_i32_0 = arith.constant 0 : i32
    %c0_i32_1 = arith.constant 0 : i32
    return %arg0, %c0_i32, %c0_i32_0 : i32, i32, i32
  }
  func.func @transform_1(%arg0: i32) -> (i32, i32) {
    %c0_i32 = arith.constant 0 : i32
    %c0_i32_0 = arith.constant 0 : i32
    %c0_i32_1 = arith.constant 0 : i32
    return %c0_i32, %c0_i32_0 : i32, i32
  }
  func.func @transform_2(%arg0: i32) -> (i32, i32) {
    %c0_i32 = arith.constant 0 : i32
    %c0_i32_0 = arith.constant 0 : i32
    %c0_i32_1 = arith.constant 0 : i32
    return %c0_i32, %c0_i32_0 : i32, i32
  }
  func.func @transform_3(%arg0: i32) -> (i32, i32) {
    %c0_i32 = arith.constant 0 : i32
    %c0_i32_0 = arith.constant 0 : i32
    %c0_i32_1 = arith.constant 0 : i32
    return %c0_i32, %c0_i32_0 : i32, i32
  }
  func.func @transform_4(%arg0: i32) -> (i32, i32) {
    %c0_i32 = arith.constant 0 : i32
    %c0_i32_0 = arith.constant 0 : i32
    %c0_i32_1 = arith.constant 0 : i32
    return %c0_i32, %c0_i32_0 : i32, i32
  }
  func.func @transform_5(%arg0: i32) -> (i32, i32) {
    %c0_i32 = arith.constant 0 : i32
    %c0_i32_0 = arith.constant 0 : i32
    %c0_i32_1 = arith.constant 0 : i32
    return %c0_i32, %c0_i32_0 : i32, i32
  }
  func.func @transform_6(%arg0: i32) -> (i32, i32, i32) {
    %c0_i32 = arith.constant 0 : i32
    %c0_i32_0 = arith.constant 0 : i32
    %c0_i32_1 = arith.constant 0 : i32
    return %arg0, %c0_i32, %c0_i32_0 : i32, i32, i32
  }
  func.func @transform_7(%arg0: i32) -> (i32, i32, i32) {
    %c0_i32 = arith.constant 0 : i32
    %c0_i32_0 = arith.constant 0 : i32
    %c0_i32_1 = arith.constant 0 : i32
    return %arg0, %c0_i32, %c0_i32_0 : i32, i32, i32
  }
  func.func @transform_8(%arg0: i32) -> (i32, i32, i32) {
    %c0_i32 = arith.constant 0 : i32
    %c0_i32_0 = arith.constant 0 : i32
    %c0_i32_1 = arith.constant 0 : i32
    return %arg0, %c0_i32, %c0_i32_0 : i32, i32, i32
  }
}

</mosaic_0001>

<bundles_post_ra>
// kernel: small_cnn_forward.1
= control target key start
LH: loop header
LB: loop body
LE: loop exit
PB: predicated region body
PF: predicated region fallthrough
CT: control target
= control target key end

     0   :  { %vm45_vm0 = vcmask 261120   ;;  %s1872_s11 = smov 127   ;;  %v1873_v3 = vmov 0.0|0.0   ;;  %s1874_s12 = smov 126   ;;  %v1880_v6 = vmov 0.0   ;;  %vm1882_vm1 = vmmov 0   ;;  %s2439_s0 = inlined_call_operand.vmem [shape: f32[2,8,342], index: 0, kind: input, shape index: {}]   ;;  %s2440_s2 = inlined_call_operand.vmem [shape: f32[8,1], index: 2, kind: input, shape index: {}]   ;;  %s2441_s1 = inlined_call_operand.vmem [shape: f32[8,72], index: 1, kind: input, shape index: {}]   ;;  %s2442_s5 = inlined_call_operand.vmem [shape: f32[1,288], index: 5, kind: input, shape index: {}]   ;;  %s2443_s6 = inlined_call_operand.vmem [shape: f32[2,8,288], index: 6, kind: output, shape index: {0}]   ;;  %s2444_s4 = inlined_call_operand.vmem [shape: f32[8,1], index: 4, kind: input, shape index: {}]   ;;  %s2445_s3 = inlined_call_operand.vmem [shape: f32[8,72], index: 3, kind: input, shape index: {}]   ;;  %s2446_s7 = inlined_call_operand.vmem [shape: f32[2,8,288], index: 7, kind: output, shape index: {1}]   ;;  %s2447_s8 = inlined_call_operand.vmem [shape: f32[2,8,288], index: 8, kind: output, shape index: {2}]  }
   0x1   :  { %v1943_v0 = vld [vmem:[%s2439_s0 + $0x8] sm:$0xff]  ;;  %v1948_v1 = vld [vmem:[%s2439_s0] sm:$0xff]  ;;  %v49_v2 = vld [vmem:[%s2439_s0 + $0x10] sm:$0xff]  ;;  %1751 = vmatprep.subr.bf16.mxu1 %v1873_v3  ;;  %s1875_s15 = smov 110   ;;  %s1876_s16 = smov 109   ;;  %30 = vst [vmem:[#allocation3] sm:$0xff] %v1880_v6  ;;  %315 = vmatprep.mubr.f32.mxu0 %v1880_v6 }
   0x2   :  { %55 = vrot.lane.b32.xlu0 %v1943_v0, %s1872_s11  ;;  %53 = vrot.lane.b32.xlu1 %v1948_v1, %s1872_s11  ;;  %46 = vst.msk [vmem:[#allocation2 + $0x10] sm:$0xff] %vm45_vm0, %v49_v2  ;;  %v1574_v4 = vld [vmem:[%s2439_s0 + $0x28] sm:$0xff]  ;;  %s1877_s17 = smov 108   ;;  %s1878_s18 = smov 92   ;;  %32 = vst [vmem:[#allocation3 + $0x10] sm:$0xff] %v1880_v6  ;;  %v2004_v7 = vld [vmem:[%s2439_s0 + $0x20] sm:$0xff] }
   0x3   :  { %s1879_s19 = smov 91   ;;  %s1881_s20 = smov 90   ;;  %1669 = vmatprep.mubr.msk.f32.mxu1 %vm1882_vm1, %v1880_v6  ;;  %v2017_v8 = vld [vmem:[%s2439_s0 + $0x18] sm:$0xff]  ;;  %v1883_v9 = vmov 0   ;;  %v39_v10 = vld [vmem:[%s2440_s2] sm:$0xff]  ;;  %vm59_vm2 = vcmask 1039360  }
   0x4   :  { %1870 = vset.pattern.permute.xlu0 %v1883_v9  ;;  %1871 = vset.pattern.permute.xlu1 %v1883_v9  ;;  %vm80_vm3 = vcmask 1031168   ;;  %vm101_vm4 = vcmask 900096   ;;  %vm122_vm5 = vcmask 891904   ;;  %vm143_vm6 = vcmask 883712   ;;  %s1884_s13 = smov 19   ;;  %s1885_s25 = smov 105  }
   0x5   :  { %vm164_vm7 = vcmask 752640   ;;  %vm185_vm8 = vcmask 744448   ;;  %vm206_vm9 = vcmask 736256   ;;  %vm247_vm10 = vcmask 588800   ;;  %s1887_s2 = smov 23   ;;  %s1888_s26 = smov 22  }
   0x6   :  { %57 = vrot.lane.b32.xlu0 %v49_v2, %s1872_s11  ;;  %76 = vrot.lane.b32.xlu1 %v1943_v0, %s1874_s12  ;;  %vm35_vm11 = vcmask 359424   ;;  %vm432_vm12 = vcmask 1047704   ;;  %vm426_vm13 = vcmask 154624   ;;  %vm435_vm14 = vcmask 416768   ;;  %s1890_s27 = smov 5   ;;  %s1891_s28 = smov 41  }
   0x7   :  { %36 = vst.msk [vmem:[#allocation3 + $0x28] sm:$0xff] %vm35_vm11, %v1880_v6  ;;  %vm802_vm15 = vcmask 72704   ;;  %vm791_vm11 = vcmask 859136   ;;  %s1892_s29 = smov 42  }
   0x9   :  { %v1965_v5 = vld [vmem:[#allocation2 + $0x10] sm:$0xff] }
   0xa   :  { %78 = vrot.lane.b32.xlu0 %v49_v2, %s1874_s12  ;;  %97 = vrot.lane.b32.xlu1 %v1943_v0, %s1875_s15  ;;  %443 = vst.msk [vmem:[#allocation2 + $0x10] sm:$0xff] %vm45_vm0, %v1574_v4 }
   0xe   :  { %99 = vrot.lane.b32.xlu0 %v49_v2, %s1875_s15  ;;  %74 = vrot.lane.b32.xlu1 %v1948_v1, %s1874_s12 }
  0x12   :  { %95 = vrot.lane.b32.xlu0 %v1948_v1, %s1875_s15  ;;  %118 = vrot.lane.b32.xlu1 %v1943_v0, %s1876_s16 }
  0x16   :  { %120 = vrot.lane.b32.xlu0 %v49_v2, %s1876_s16  ;;  %139 = vrot.lane.b32.xlu1 %v1943_v0, %s1877_s17 }
  0x1a   :  { %141 = vrot.lane.b32.xlu0 %v49_v2, %s1877_s17  ;;  %116 = vrot.lane.b32.xlu1 %v1948_v1, %s1876_s16 }
  0x1e   :  { %137 = vrot.lane.b32.xlu0 %v1948_v1, %s1877_s17  ;;  %160 = vrot.lane.b32.xlu1 %v1943_v0, %s1878_s18 }
  0x22   :  { %162 = vrot.lane.b32.xlu0 %v49_v2, %s1878_s18  ;;  %181 = vrot.lane.b32.xlu1 %v1943_v0, %s1879_s19 }
  0x26   :  { %183 = vrot.lane.b32.xlu0 %v49_v2, %s1879_s19  ;;  %158 = vrot.lane.b32.xlu1 %v1948_v1, %s1878_s18 }
  0x2a   :  { %179 = vrot.lane.b32.xlu0 %v1948_v1, %s1879_s19  ;;  %202 = vrot.lane.b32.xlu1 %v1943_v0, %s1881_s20 }
  0x2e   :  { %204 = vrot.lane.b32.xlu0 %v49_v2, %s1881_s20  ;;  %452 = vrot.lane.b32.xlu1 %v2004_v7, %s1872_s11 }
  0x32   :  { %454 = vrot.lane.b32.xlu0 %v1574_v4, %s1872_s11  ;;  %200 = vrot.lane.b32.xlu1 %v1948_v1, %s1881_s20 }
  0x36   :  { %450 = vrot.lane.b32.xlu0 %v2017_v8, %s1872_s11  ;;  %472 = vrot.lane.b32.xlu1 %v2004_v7, %s1874_s12 }
  0x3a   :  { %474 = vrot.lane.b32.xlu0 %v1574_v4, %s1874_s12  ;;  %492 = vrot.lane.b32.xlu1 %v2004_v7, %s1875_s15 }
  0x3e   :  { %494 = vrot.lane.b32.xlu0 %v1574_v4, %s1875_s15  ;;  %470 = vrot.lane.b32.xlu1 %v2017_v8, %s1874_s12 }
  0x42   :  { %490 = vrot.lane.b32.xlu0 %v2017_v8, %s1875_s15  ;;  %512 = vrot.lane.b32.xlu1 %v2004_v7, %s1876_s16 }
  0x46   :  { %514 = vrot.lane.b32.xlu0 %v1574_v4, %s1876_s16  ;;  %532 = vrot.lane.b32.xlu1 %v2004_v7, %s1877_s17 }
  0x4a   :  { %534 = vrot.lane.b32.xlu0 %v1574_v4, %s1877_s17  ;;  %510 = vrot.lane.b32.xlu1 %v2017_v8, %s1876_s16 }
  0x4e   :  { %530 = vrot.lane.b32.xlu0 %v2017_v8, %s1877_s17  ;;  %552 = vrot.lane.b32.xlu1 %v2004_v7, %s1878_s18 }
  0x52   :  { %554 = vrot.lane.b32.xlu0 %v1574_v4, %s1878_s18  ;;  %572 = vrot.lane.b32.xlu1 %v2004_v7, %s1879_s19 }
  0x56   :  { %574 = vrot.lane.b32.xlu0 %v1574_v4, %s1879_s19  ;;  %550 = vrot.lane.b32.xlu1 %v2017_v8, %s1878_s18 }
  0x5a   :  { %570 = vrot.lane.b32.xlu0 %v2017_v8, %s1879_s19  ;;  %592 = vrot.lane.b32.xlu1 %v2004_v7, %s1881_s20 }
  0x5e   :  { %594 = vrot.lane.b32.xlu0 %v1574_v4, %s1881_s20  ;;  %590 = vrot.lane.b32.xlu1 %v2017_v8, %s1881_s20 }
  0x62   :  { %244 = vperm.xlu0 %1870, %v39_v10  }
  0x74   :  { %v56_v11 = vpop.permute.xlu0 %55  ;;  %v54_v12 = vpop.permute.xlu1 %53 }
  0x75   :  { %v60_v13 = vsel %vm59_vm2, %v54_v12, %v56_v11 }
  0x76   :  { %v1737_v18 = vpack.c.bf16 %v60_v13, %v1948_v1 }
  0x78   :  { %v58_v14 = vpop.permute.xlu0 %57  ;;  %v77_v15 = vpop.permute.xlu1 %76 }
  0x79   :  { %v61_v16 = vsel %vm59_vm2, %v56_v11, %v58_v14  ;;  %67 = vst.msk [vmem:[#allocation2 + $0x28] sm:$0xff] %vm45_vm0, %v58_v14  ;;  %v2092_v11 = vld [vmem:[%s2441_s1] sm:$0xff]  ;;  %s1889_s1 = smov 6  }
  0x7a   :  { %v1735_v17 = vpack.c.bf16 %v61_v16, %v1943_v0 }
  0x7c   :  { %v79_v19 = vpop.permute.xlu0 %78  ;;  %v98_v20 = vpop.permute.xlu1 %97  ;;  %1736 = vmatprep.subr.bf16.mxu0 %v1735_v17 }
  0x7d   :  { %88 = vst.msk [vmem:[#allocation2 + $0x40] sm:$0xff] %vm45_vm0, %v79_v19  ;;  %1738 = vmatpush1.bf16.msra.mxu0 %v1737_v18  ;;  %v82_v24 = vsel %vm80_vm3, %v77_v15, %v79_v19  ;;  %v606_v19 = vld [vmem:[#allocation2 + $0x10] sm:$0xff] }
  0x80   :  { %v100_v21 = vpop.permute.xlu0 %99  ;;  %v75_v22 = vpop.permute.xlu1 %74  ;;  %v220_v23 = vld [vmem:[#allocation2 + $0x28] sm:$0xff] }
  0x81   :  { %v103_v25 = vsel %vm101_vm4, %v98_v20, %v100_v21  ;;  %109 = vst.msk [vmem:[#allocation2 + $0x58] sm:$0xff] %vm45_vm0, %v100_v21  ;;  %v1752_v26 = vpack.c.bf16 %v220_v23, %v1965_v5  ;;  %v81_v28 = vsel %vm80_vm3, %v75_v22, %v77_v15 }
  0x82   :  { %v1739_v27 = vpack.c.bf16 %v103_v25, %v82_v24 }
  0x83   :  { %1753 = vmatpush3.bf16.msra.mxu1 %v1752_v26 }
  0x84   :  { %v96_v29 = vpop.permute.xlu0 %95  ;;  %v119_v30 = vpop.permute.xlu1 %118  ;;  %1754 = vmatprep.subr.bf16.mxu1 %v1873_v3  ;;  %1740 = vmatprep.subr.bf16.mxu0 %v1739_v27  ;;  %v223_v35 = vld [vmem:[#allocation2 + $0x40] sm:$0xff] }
  0x85   :  { %v102_v31 = vsel %vm101_vm4, %v96_v29, %v98_v20 }
  0x86   :  { %v1741_v32 = vpack.c.bf16 %v102_v31, %v81_v28 }
  0x88   :  { %v121_v33 = vpop.permute.xlu0 %120  ;;  %v140_v34 = vpop.permute.xlu1 %139  ;;  %v226_v36 = vld [vmem:[#allocation2 + $0x58] sm:$0xff]  ;;  %1742 = vmatpush1.bf16.msra.mxu0 %v1741_v32 }
  0x89   :  { %130 = vst.msk [vmem:[#allocation2 + $0x70] sm:$0xff] %vm45_vm0, %v121_v33  ;;  %v1755_v37 = vpack.c.bf16 %v226_v36, %v223_v35  ;;  %v124_v40 = vsel %vm122_vm5, %v119_v30, %v121_v33 }
  0x8b   :  { %1756 = vmatpush3.bf16.msra.mxu1 %v1755_v37 }
  0x8c   :  { %v142_v38 = vpop.permute.xlu0 %141  ;;  %v117_v39 = vpop.permute.xlu1 %116  ;;  %1757 = vmatprep.subr.bf16.mxu1 %v1873_v3 }
  0x8d   :  { %v145_v41 = vsel %vm143_vm6, %v140_v34, %v142_v38  ;;  %151 = vst.msk [vmem:[#allocation2 + $0x88] sm:$0xff] %vm45_vm0, %v142_v38  ;;  %v123_v43 = vsel %vm122_vm5, %v117_v39, %v119_v30 }
  0x8e   :  { %v1743_v42 = vpack.c.bf16 %v145_v41, %v124_v40 }
  0x90   :  { %v138_v44 = vpop.permute.xlu0 %137  ;;  %v161_v45 = vpop.permute.xlu1 %160  ;;  %1744 = vmatprep.subr.bf16.mxu0 %v1743_v42  ;;  %v229_v50 = vld [vmem:[#allocation2 + $0x70] sm:$0xff] }
  0x91   :  { %v144_v46 = vsel %vm143_vm6, %v138_v44, %v140_v34 }
  0x92   :  { %v1745_v47 = vpack.c.bf16 %v144_v46, %v123_v43 }
  0x94   :  { %v163_v48 = vpop.permute.xlu0 %162  ;;  %v182_v49 = vpop.permute.xlu1 %181  ;;  %v232_v51 = vld [vmem:[#allocation2 + $0x88] sm:$0xff]  ;;  %1746 = vmatpush1.bf16.msra.mxu0 %v1745_v47 }
  0x95   :  { %172 = vst.msk [vmem:[#allocation2 + $0xa0] sm:$0xff] %vm45_vm0, %v163_v48  ;;  %v1758_v52 = vpack.c.bf16 %v232_v51, %v229_v50  ;;  %v166_v55 = vsel %vm164_vm7, %v161_v45, %v163_v48 }
  0x97   :  { %1759 = vmatpush3.bf16.msra.mxu1 %v1758_v52 }
  0x98   :  { %v184_v53 = vpop.permute.xlu0 %183  ;;  %v159_v54 = vpop.permute.xlu1 %158  ;;  %1760 = vmatprep.subr.bf16.mxu1 %v1873_v3 }
  0x99   :  { %v187_v56 = vsel %vm185_vm8, %v182_v49, %v184_v53  ;;  %193 = vst.msk [vmem:[#allocation2 + $0xb8] sm:$0xff] %vm45_vm0, %v184_v53  ;;  %v165_v58 = vsel %vm164_vm7, %v159_v54, %v161_v45 }
  0x9a   :  { %v1747_v57 = vpack.c.bf16 %v187_v56, %v166_v55 }
  0x9c   :  { %v180_v59 = vpop.permute.xlu0 %179  ;;  %v203_v60 = vpop.permute.xlu1 %202  ;;  %1748 = vmatprep.subr.bf16.mxu0 %v1747_v57  ;;  %v235_v1 = vld [vmem:[#allocation2 + $0xa0] sm:$0xff] }
  0x9d   :  { %v186_v61 = vsel %vm185_vm8, %v180_v59, %v182_v49 }
  0x9e   :  { %v1749_v62 = vpack.c.bf16 %v186_v61, %v165_v58 }
  0xa0   :  { %v205_v63 = vpop.permute.xlu0 %204  ;;  %v453_v0 = vpop.permute.xlu1 %452  ;;  %v238_v2 = vld [vmem:[#allocation2 + $0xb8] sm:$0xff]  ;;  %1750 = vmatpush1.bf16.msra.mxu0 %v1749_v62 }
  0xa1   :  { %v208_v4 = vsel %vm206_vm9, %v203_v60, %v205_v63  ;;  %214 = vst.msk [vmem:[#allocation2 + $0xd0] sm:$0xff] %vm45_vm0, %v205_v63  ;;  %v1761_v5 = vpack.c.bf16 %v238_v2, %v235_v1 }
  0xa2   :  { %267 = vmatprep.subr.mxu0 %v208_v4 }
  0xa3   :  { %1762 = vmatpush3.bf16.msra.mxu1 %v1761_v5 }
  0xa4   :  { %v455_v9 = vpop.permute.xlu0 %454  ;;  %v201_v10 = vpop.permute.xlu1 %200  ;;  %1667 = vmatprep.subr.mxu1 %v1880_v6 }
  0xa5   :  { %v457_v12 = vsel %vm59_vm2, %v453_v0, %v455_v9  ;;  %463 = vst.msk [vmem:[#allocation2 + $0x28] sm:$0xff] %vm45_vm0, %v455_v9  ;;  %v207_v13 = vsel %vm206_vm9, %v201_v10, %v203_v60 }
  0xa6   :  { %268 = vmatpush1.msra.mxu0 %v207_v13  ;;  %v1763_v14 = vpack.c.bf16 %v457_v12, %v2004_v7  ;;  %v399_v12 = vlaneseq }
  0xa7   :  { %1567 = vmatmul.mubr.msk.f32.vlgmr.msra.gmra.mrb[0].mxu0 %vm247_vm10, %v2092_v11 }
  0xa8   :  { %v451_v15 = vpop.permute.xlu0 %450  ;;  %v241_v16 = vld [vmem:[#allocation2 + $0xd0] sm:$0xff]  ;;  %v473_v17 = vpop.permute.xlu1 %472  ;;  %1764 = vmatprep.subr.bf16.mxu0 %v1763_v14  ;;  %695 = vmatprep.mubr.f32.mxu0 %v1880_v6  ;;  %v400_v13 = vshrl.u32 %v399_v12, 7 }
  0xa9   :  { %v456_v18 = vsel %vm59_vm2, %v451_v15, %v453_v0  ;;  %1668 = vmatpush3.msra.mxu1 %v241_v16  ;;  %v37_v16 = vld [vmem:[%s2442_s5] sm:$0x7] }
  0xaa   :  { %1779 = vmatprep.subr.bf16.mxu1 %v1873_v3  ;;  %1670 = vmatmul.mubr.msk.f32.vlgmr.msra.gmra.mrb[0].mxu1 %vm247_vm10, %v2092_v11  ;;  %v1765_v7 = vpack.c.bf16 %v456_v18, %v2017_v8  ;;  %v401_v14 = vsub.s32 0, %v400_v13  ;;  %v409_v18 = vsub.s32 2, %v400_v13 }
  0xab   :  { %1690 = vmatprep.mubr.msk.f32.mxu1 %vm1882_vm1, %v1880_v6 }
  0xac   :  { %v475_v20 = vpop.permute.xlu0 %474  ;;  %v493_v21 = vpop.permute.xlu1 %492  ;;  %v609_v22 = vld [vmem:[#allocation2 + $0x28] sm:$0xff]  ;;  %1766 = vmatpush1.bf16.msra.mxu0 %v1765_v7  ;;  %v402_v7 = vrot.slane %v37_v16, %v401_v14 }
  0xad   :  { %483 = vst.msk [vmem:[#allocation2 + $0x40] sm:$0xff] %vm45_vm0, %v475_v20  ;;  %v1780_v23 = vpack.c.bf16 %v609_v22, %v606_v19  ;;  %v477_v26 = vsel %vm80_vm3, %v473_v17, %v475_v20 }
  0xaf   :  { %1781 = vmatpush3.bf16.msra.mxu1 %v1780_v23 }
  0xb0   :  { %v495_v24 = vpop.permute.xlu0 %494  ;;  %v471_v25 = vpop.permute.xlu1 %470  ;;  %1782 = vmatprep.subr.bf16.mxu1 %v1873_v3 }
  0xb1   :  { %v497_v27 = vsel %vm101_vm4, %v493_v21, %v495_v24  ;;  %503 = vst.msk [vmem:[#allocation2 + $0x58] sm:$0xff] %vm45_vm0, %v495_v24  ;;  %v476_v28 = vsel %vm80_vm3, %v471_v25, %v473_v17  ;;  %v410_v25 = vrot.slane %v37_v16, %v409_v18 }
  0xb2   :  { %v1767_v8 = vpack.c.bf16 %v497_v27, %v477_v26 }
  0xb4   :  { %v491_v29 = vpop.permute.xlu0 %490  ;;  %v513_v30 = vpop.permute.xlu1 %512  ;;  %1768 = vmatprep.subr.bf16.mxu0 %v1767_v8  ;;  %v612_v35 = vld [vmem:[#allocation2 + $0x40] sm:$0xff] }
  0xb5   :  { %v496_v31 = vsel %vm101_vm4, %v491_v29, %v493_v21 }
  0xb6   :  { %v1769_v32 = vpack.c.bf16 %v496_v31, %v476_v28 }
  0xb8   :  { %v515_v33 = vpop.permute.xlu0 %514  ;;  %v533_v34 = vpop.permute.xlu1 %532  ;;  %v615_v36 = vld [vmem:[#allocation2 + $0x58] sm:$0xff]  ;;  %1770 = vmatpush1.bf16.msra.mxu0 %v1769_v32 }
  0xb9   :  { %523 = vst.msk [vmem:[#allocation2 + $0x70] sm:$0xff] %vm45_vm0, %v515_v33  ;;  %v1783_v37 = vpack.c.bf16 %v615_v36, %v612_v35  ;;  %v517_v40 = vsel %vm122_vm5, %v513_v30, %v515_v33 }
  0xbb   :  { %1784 = vmatpush3.bf16.msra.mxu1 %v1783_v37 }
  0xbc   :  { %v535_v38 = vpop.permute.xlu0 %534  ;;  %v511_v39 = vpop.permute.xlu1 %510  ;;  %1785 = vmatprep.subr.bf16.mxu1 %v1873_v3 }
  0xbd   :  { %v537_v41 = vsel %vm143_vm6, %v533_v34, %v535_v38  ;;  %543 = vst.msk [vmem:[#allocation2 + $0x88] sm:$0xff] %vm45_vm0, %v535_v38  ;;  %v516_v43 = vsel %vm122_vm5, %v511_v39, %v513_v30 }
  0xbe   :  { %v1771_v42 = vpack.c.bf16 %v537_v41, %v517_v40 }
  0xc0   :  { %v531_v44 = vpop.permute.xlu0 %530  ;;  %v553_v45 = vpop.permute.xlu1 %552  ;;  %1772 = vmatprep.subr.bf16.mxu0 %v1771_v42  ;;  %v618_v50 = vld [vmem:[#allocation2 + $0x70] sm:$0xff] }
  0xc1   :  { %v536_v46 = vsel %vm143_vm6, %v531_v44, %v533_v34 }
  0xc2   :  { %v1773_v47 = vpack.c.bf16 %v536_v46, %v516_v43 }
  0xc4   :  { %v555_v48 = vpop.permute.xlu0 %554  ;;  %v573_v49 = vpop.permute.xlu1 %572  ;;  %v621_v51 = vld [vmem:[#allocation2 + $0x88] sm:$0xff]  ;;  %1774 = vmatpush1.bf16.msra.mxu0 %v1773_v47 }
  0xc5   :  { %563 = vst.msk [vmem:[#allocation2 + $0xa0] sm:$0xff] %vm45_vm0, %v555_v48  ;;  %v1786_v52 = vpack.c.bf16 %v621_v51, %v618_v50  ;;  %v557_v55 = vsel %vm164_vm7, %v553_v45, %v555_v48 }
  0xc7   :  { %1787 = vmatpush3.bf16.msra.mxu1 %v1786_v52 }
  0xc8   :  { %v575_v53 = vpop.permute.xlu0 %574  ;;  %v551_v54 = vpop.permute.xlu1 %550  ;;  %1788 = vmatprep.subr.bf16.mxu1 %v1873_v3 }
  0xc9   :  { %v577_v56 = vsel %vm185_vm8, %v573_v49, %v575_v53  ;;  %583 = vst.msk [vmem:[#allocation2 + $0xb8] sm:$0xff] %vm45_vm0, %v575_v53  ;;  %v556_v58 = vsel %vm164_vm7, %v551_v54, %v553_v45 }
  0xca   :  { %v1775_v57 = vpack.c.bf16 %v577_v56, %v557_v55 }
  0xcc   :  { %v571_v59 = vpop.permute.xlu0 %570  ;;  %v593_v60 = vpop.permute.xlu1 %592  ;;  %1776 = vmatprep.subr.bf16.mxu0 %v1775_v57  ;;  %v624_v1 = vld [vmem:[#allocation2 + $0xa0] sm:$0xff] }
  0xcd   :  { %v576_v61 = vsel %vm185_vm8, %v571_v59, %v573_v49 }
  0xce   :  { %v1777_v62 = vpack.c.bf16 %v576_v61, %v556_v58 }
  0xd0   :  { %v595_v63 = vpop.permute.xlu0 %594  ;;  %v591_v0 = vpop.permute.xlu1 %590  ;;  %v627_v2 = vld [vmem:[#allocation2 + $0xb8] sm:$0xff]  ;;  %1778 = vmatpush1.bf16.msra.mxu0 %v1777_v62 }
  0xd1   :  { %v597_v4 = vsel %vm206_vm9, %v593_v60, %v595_v63  ;;  %603 = vst.msk [vmem:[#allocation2 + $0xd0] sm:$0xff] %vm45_vm0, %v595_v63  ;;  %v596_v5 = vsel %vm206_vm9, %v591_v0, %v593_v60  ;;  %v1789_v9 = vpack.c.bf16 %v627_v2, %v624_v1  ;;  %v805_v2 = vld [vmem:[%s2444_s4] sm:$0xff] }
  0xd2   :  { %647 = vmatprep.subr.mxu0 %v597_v4 }
  0xd3   :  { %1790 = vmatpush3.bf16.msra.mxu1 %v1789_v9 }
  0xd4   :  { %1688 = vmatprep.subr.mxu1 %v1880_v6  ;;  %648 = vmatpush1.msra.mxu0 %v596_v5 }
  0xd5   :  { %1596 = vmatmul.mubr.msk.f32.vlgmr.msra.gmra.mrb[2].mxu0 %vm247_vm10, %v2092_v11 }
  0xd6   :  { %1071 = vmatprep.mubr.f32.mxu0 %v1880_v6 }
  0xd8   :  { %v630_v10 = vld [vmem:[#allocation2 + $0xd0] sm:$0xff] }
  0xd9   :  { %1689 = vmatpush3.msra.mxu1 %v630_v10 }
  0xda   :  { %1691 = vmatmul.mubr.msk.f32.vlgmr.msra.gmra.mrb[2].mxu1 %vm247_vm10, %v2092_v11  ;;  %1807 = vmatprep.subr.bf16.mxu1 %v1873_v3  ;;  %v405_v11 = vsub.s32 1, %v400_v13 }
  0xdb   :  { %1711 = vmatprep.mubr.msk.f32.mxu1 %vm1882_vm1, %v1880_v6 }
  0xdc   :  { %v406_v29 = vrot.slane %v37_v16, %v405_v11 }
  0xe1   :  { %v245_v15 = vpop.permute.xlu0 %244 }
 0x17a   :  { %v317_v17 = vpop.f32.mrb[0].mxu0 }
 0x17b   :  { %v318_v19 = vadd.f32 %v317_v17, %v245_v15  ;;  %v319_v20 = vpop.f32.mrb[1].mxu0 }
 0x17c   :  { %v320_v21 = vadd.f32 %v319_v20, %v245_v15 }
 0x17d   :  { %392 = vst [vmem:[%s2443_s6] sm:$0xff] %v318_v19  ;;  %v395_v22 = vmax.f32 %v318_v19, 0.0  ;;  %v388_v23 = vpop.f32.mrb[0].mxu1 }
 0x17e   :  { %v389_v24 = vadd.f32 %v388_v23, %v245_v15  ;;  %393 = vst [vmem:[%s2443_s6 + $0x8] sm:$0xff] %v320_v21  ;;  %v1671_v26 = vpop.f32.mrb[1].mxu1  ;;  %v396_v28 = vmax.f32 %v320_v21, 0.0 }
 0x17f   :  { %v414_v27 = vmul.f32 %v402_v7, %v395_v22 }
 0x180   :  { %394 = vst.msk [vmem:[%s2443_s6 + $0x10] sm:$0xff] %vm45_vm0, %v389_v24  ;;  %v397_v8 = vmax.f32 %v389_v24, 0.0  ;;  %v415_v31 = vmul.f32 %v406_v29, %v396_v28 }
 0x181   :  { %420 = vrot.lane.b32.xlu0 %v414_v27, %s1884_s13 }
 0x182   :  { %v416_v30 = vmul.f32 %v410_v25, %v397_v8 }
 0x184   :  { %424 = vrot.lane.b32.xlu1 %v416_v30, %s1884_s13 }
 0x188   :  { %422 = vrot.lane.b32.xlu1 %v415_v31, %s1884_s13 }
 0x1a8   :  { %v697_v32 = vpop.f32.mrb[2].mxu0 }
 0x1a9   :  { %v698_v33 = vadd.f32 %v697_v32, %v245_v15  ;;  %v699_v34 = vpop.f32.mrb[3].mxu0 }
 0x1aa   :  { %v700_v35 = vadd.f32 %v699_v34, %v245_v15 }
 0x1ab   :  { %1598 = vst [vmem:[%s2443_s6 + $0x18] sm:$0xff] %v698_v33  ;;  %v776_v42 = vmax.f32 %v698_v33, 0.0 }
 0x1ac   :  { %1599 = vst [vmem:[%s2443_s6 + $0x20] sm:$0xff] %v700_v35  ;;  %v777_v36 = vmax.f32 %v700_v35, 0.0 }
 0x1ad   :  { %v768_v37 = vpop.f32.mrb[2].mxu1  ;;  %v779_v44 = vmul.f32 %v776_v42, %v402_v7 }
 0x1ae   :  { %v769_v38 = vadd.f32 %v768_v37, %v245_v15  ;;  %v1692_v39 = vpop.f32.mrb[3].mxu1  ;;  %v780_v40 = vmul.f32 %v777_v36, %v406_v29 }
 0x1b0   :  { %1600 = vst.msk [vmem:[%s2443_s6 + $0x28] sm:$0xff] %vm45_vm0, %v769_v38  ;;  %v778_v41 = vmax.f32 %v769_v38, 0.0  ;;  %787 = vrot.lane.b32.xlu0 %v780_v40, %s1885_s25  ;;  %s1886_s6 = smov 24  }
 0x1b2   :  { %v781_v43 = vmul.f32 %v778_v41, %v410_v25 }
 0x1b4   :  { %789 = vrot.lane.b32.xlu1 %v781_v43, %s1885_s25 }
 0x1b8   :  { %785 = vrot.lane.b32.xlu1 %v779_v44, %s1885_s25 }
 0x1f3   :  { %v421_v45 = vpop.permute.xlu0 %420 }
 0x1f4   :  { %433 = vst.msk [vmem:[#allocation3] sm:$0xff] %vm432_vm12, %v421_v45  ;;  %vm798_vm12 = vcmask 1048392  }
 0x1f6   :  { %v425_v46 = vpop.permute.xlu1 %424 }
 0x1fa   :  { %v423_v47 = vpop.permute.xlu1 %422 }
 0x1fb   :  { %v2165_v48 = vld [vmem:[#allocation3] sm:$0xff]  ;;  %v2167_v49 = vsel %vm426_vm13, %v421_v45, %v423_v47  ;;  %v428_v50 = vsel %vm426_vm13, %v423_v47, %v425_v46 }
 0x1fc   :  { %838 = vrot.lane.b32.xlu1 %v2165_v48, %s1874_s12  ;;  %818 = vrot.lane.b32.xlu0 %v2165_v48, %s1872_s11  ;;  %436 = vst.msk [vmem:[#allocation3 + $0x10] sm:$0xff] %vm435_vm14, %v428_v50 }
 0x200   :  { %878 = vrot.lane.b32.xlu1 %v2165_v48, %s1876_s16  ;;  %858 = vrot.lane.b32.xlu0 %v2165_v48, %s1875_s15 }
 0x204   :  { %918 = vrot.lane.b32.xlu1 %v2165_v48, %s1878_s18  ;;  %898 = vrot.lane.b32.xlu0 %v2165_v48, %s1877_s17 }
 0x208   :  { %958 = vrot.lane.b32.xlu1 %v2165_v48, %s1881_s20  ;;  %938 = vrot.lane.b32.xlu0 %v2165_v48, %s1879_s19 }
 0x20c   :  { %840 = vrot.lane.b32.xlu1 %v2167_v49, %s1874_s12  ;;  %820 = vrot.lane.b32.xlu0 %v2167_v49, %s1872_s11 }
 0x210   :  { %860 = vrot.lane.b32.xlu1 %v2167_v49, %s1875_s15 }
 0x214   :  { %880 = vrot.lane.b32.xlu1 %v2167_v49, %s1876_s16 }
 0x218   :  { %900 = vrot.lane.b32.xlu1 %v2167_v49, %s1877_s17 }
 0x21c   :  { %920 = vrot.lane.b32.xlu1 %v2167_v49, %s1878_s18 }
 0x220   :  { %940 = vrot.lane.b32.xlu1 %v2167_v49, %s1879_s19 }
 0x222   :  { %v788_v52 = vpop.permute.xlu0 %787 }
 0x224   :  { %960 = vrot.lane.b32.xlu1 %v2167_v49, %s1881_s20 }
 0x226   :  { %v790_v51 = vpop.permute.xlu1 %789 }
 0x227   :  { %803 = vst.msk [vmem:[#allocation3 + $0x28] sm:$0xff] %vm802_vm15, %v790_v51  ;;  %v2201_v53 = vsel %vm791_vm11, %v788_v52, %v790_v51 }
 0x22a   :  { %v786_v54 = vpop.permute.xlu1 %785 }
 0x22b   :  { %799 = vst.msk [vmem:[#allocation3 + $0x10] sm:$0xff] %vm798_vm12, %v786_v54  ;;  %v792_v55 = vsel %vm791_vm11, %v786_v54, %v788_v52 }
 0x22e   :  { %v2203_v56 = vld [vmem:[#allocation3 + $0x28] sm:$0xff] }
 0x22f   :  { %1234 = vrot.lane.b32.xlu0 %v2203_v56, %s1886_s6  ;;  %1260 = vrot.lane.b32.xlu1 %v2203_v56, %s1887_s2 }
 0x232   :  { %v808_v57 = vld [vmem:[#allocation3 + $0x10] sm:$0xff] }
 0x233   :  { %811 = vst.msk [vmem:[#allocation2 + $0x10] sm:$0xff] %vm45_vm0, %v808_v57  ;;  %1286 = vrot.lane.b32.xlu0 %v2203_v56, %s1888_s26  ;;  %1312 = vrot.lane.b32.xlu1 %v2203_v56, %s1889_s1 }
 0x237   :  { %1338 = vrot.lane.b32.xlu0 %v2203_v56, %s1890_s27  ;;  %822 = vrot.lane.b32.xlu1 %v808_v57, %s1872_s11  ;;  %s1893_s11 = smov 40  }
 0x23a   :  { %v974_v29 = vld [vmem:[#allocation2 + $0x10] sm:$0xff] }
 0x23b   :  { %842 = vrot.lane.b32.xlu0 %v808_v57, %s1874_s12  ;;  %1184 = vrot.lane.b32.xlu1 %v808_v57, %s1891_s28  ;;  %s1894_s12 = smov 4  }
 0x23f   :  { %862 = vrot.lane.b32.xlu0 %v808_v57, %s1875_s15  ;;  %1228 = vrot.lane.b32.xlu1 %v808_v57, %s1886_s6 }
 0x243   :  { %882 = vrot.lane.b32.xlu0 %v808_v57, %s1876_s16  ;;  %1254 = vrot.lane.b32.xlu1 %v808_v57, %s1887_s2 }
 0x247   :  { %902 = vrot.lane.b32.xlu0 %v808_v57, %s1877_s17  ;;  %1306 = vrot.lane.b32.xlu1 %v808_v57, %s1889_s1 }
 0x24b   :  { %922 = vrot.lane.b32.xlu0 %v808_v57, %s1878_s18  ;;  %1165 = vrot.lane.b32.xlu1 %v792_v55, %s1892_s29 }
 0x24f   :  { %942 = vrot.lane.b32.xlu0 %v808_v57, %s1879_s19  ;;  %1186 = vrot.lane.b32.xlu1 %v792_v55, %s1891_s28 }
 0x253   :  { %962 = vrot.lane.b32.xlu0 %v808_v57, %s1881_s20  ;;  %1209 = vrot.lane.b32.xlu1 %v2201_v53, %s1893_s11 }
 0x257   :  { %1163 = vrot.lane.b32.xlu0 %v808_v57, %s1892_s29  ;;  %1232 = vrot.lane.b32.xlu1 %v2201_v53, %s1886_s6 }
 0x25b   :  { %1205 = vrot.lane.b32.xlu0 %v808_v57, %s1893_s11  ;;  %1256 = vrot.lane.b32.xlu1 %v792_v55, %s1887_s2 }
 0x25f   :  { %1280 = vrot.lane.b32.xlu0 %v808_v57, %s1888_s26  ;;  %1282 = vrot.lane.b32.xlu1 %v792_v55, %s1888_s26 }
 0x263   :  { %1332 = vrot.lane.b32.xlu0 %v808_v57, %s1890_s27  ;;  %1308 = vrot.lane.b32.xlu1 %v792_v55, %s1889_s1 }
 0x267   :  { %1167 = vrot.lane.b32.xlu0 %v2201_v53, %s1892_s29  ;;  %1334 = vrot.lane.b32.xlu1 %v792_v55, %s1890_s27 }
 0x26b   :  { %1188 = vrot.lane.b32.xlu0 %v2201_v53, %s1891_s28  ;;  %1360 = vrot.lane.b32.xlu1 %v792_v55, %s1894_s12 }
 0x26e   :  { %v839_v58 = vpop.permute.xlu1 %838  ;;  %v819_v0 = vpop.permute.xlu0 %818 }
 0x26f   :  { %1207 = vrot.lane.b32.xlu0 %v792_v55, %s1893_s11  ;;  %1358 = vrot.lane.b32.xlu1 %v808_v57, %s1894_s12 }
 0x272   :  { %v2238_v59 = vpop.permute.xlu1 %878  ;;  %v859_v4 = vpop.permute.xlu0 %858 }
 0x273   :  { %1230 = vrot.lane.b32.xlu0 %v792_v55, %s1886_s6  ;;  %1001 = vperm.xlu1 %1871, %v805_v2  }
 0x276   :  { %v2241_v60 = vpop.permute.xlu1 %918  ;;  %v899_v9 = vpop.permute.xlu0 %898 }
 0x277   :  { %1258 = vrot.lane.b32.xlu0 %v2201_v53, %s1887_s2 }
 0x27a   :  { %v2245_v61 = vpop.permute.xlu1 %958  ;;  %v939_v12 = vpop.permute.xlu0 %938 }
 0x27b   :  { %1284 = vrot.lane.b32.xlu0 %v2201_v53, %s1888_s26 }
 0x27e   :  { %v841_v62 = vpop.permute.xlu1 %840  ;;  %v821_v14 = vpop.permute.xlu0 %820 }
 0x27f   :  { %1310 = vrot.lane.b32.xlu0 %v2201_v53, %s1889_s1  ;;  %v824_v7 = vsel %vm59_vm2, %v819_v0, %v821_v14  ;;  %v844_v26 = vsel %vm80_vm3, %v839_v58, %v841_v62 }
 0x280   :  { %v1793_v23 = vpack.c.bf16 %v824_v7, %v2165_v48 }
 0x282   :  { %v861_v63 = vpop.permute.xlu1 %860 }
 0x283   :  { %1336 = vrot.lane.b32.xlu0 %v2201_v53, %s1890_s27  ;;  %v864_v27 = vsel %vm101_vm4, %v859_v4, %v861_v63 }
 0x284   :  { %v1797_v35 = vpack.c.bf16 %v864_v27, %v844_v26 }
 0x286   :  { %v881_v1 = vpop.permute.xlu1 %880 }
 0x287   :  { %1362 = vrot.lane.b32.xlu0 %v2201_v53, %s1894_s12  ;;  %v884_v46 = vsel %vm122_vm5, %v2238_v59, %v881_v1 }
 0x28a   :  { %v901_v5 = vpop.permute.xlu1 %900 }
 0x28b   :  { %1364 = vrot.lane.b32.xlu0 %v2203_v56, %s1894_s12  ;;  %v904_v38 = vsel %vm143_vm6, %v899_v9, %v901_v5 }
 0x28c   :  { %v1801_v48 = vpack.c.bf16 %v904_v38, %v884_v46 }
 0x28e   :  { %v2258_v10 = vpop.permute.xlu1 %920 }
 0x292   :  { %v2260_v13 = vpop.permute.xlu1 %940 }
 0x293   :  { %v944_v51 = vsel %vm185_vm8, %v939_v12, %v2260_v13 }
 0x296   :  { %v2262_v15 = vpop.permute.xlu1 %960 }
 0x2a1   :  { %v2264_v16 = vpop.permute.xlu0 %1234  ;;  %v2266_v17 = vpop.permute.xlu1 %1260 }
 0x2a5   :  { %v2268_v18 = vpop.permute.xlu0 %1286  ;;  %v2270_v19 = vpop.permute.xlu1 %1312 }
 0x2a9   :  { %v2273_v20 = vpop.permute.xlu0 %1338  ;;  %v823_v21 = vpop.permute.xlu1 %822 }
 0x2aa   :  { %v825_v11 = vsel %vm59_vm2, %v821_v14, %v823_v21  ;;  %831 = vst.msk [vmem:[#allocation2 + $0x28] sm:$0xff] %vm45_vm0, %v823_v21  ;;  %vm1190_vm2 = vcmask 334848  }
 0x2ab   :  { %v1791_v22 = vpack.c.bf16 %v825_v11, %v2167_v49 }
 0x2ad   :  { %v843_v24 = vpop.permute.xlu0 %842  ;;  %v1185_v25 = vpop.permute.xlu1 %1184  ;;  %1792 = vmatprep.subr.bf16.mxu0 %v1791_v22 }
 0x2ae   :  { %851 = vst.msk [vmem:[#allocation2 + $0x40] sm:$0xff] %vm45_vm0, %v843_v24  ;;  %1794 = vmatpush1.bf16.msra.mxu0 %v1793_v23  ;;  %v845_v31 = vsel %vm80_vm3, %v841_v62, %v843_v24  ;;  %v924_v62 = vsel %vm164_vm7, %v2241_v60, %v2258_v10  ;;  %vm1169_vm3 = vcmask 343040   ;;  %v2327_v60 = vld [vmem:[%s2445_s3] sm:$0xff] }
 0x2af   :  { %v1805_v0 = vpack.c.bf16 %v944_v51, %v924_v62 }
 0x2b1   :  { %v863_v8 = vpop.permute.xlu0 %862  ;;  %v2282_v28 = vpop.permute.xlu1 %1228  ;;  %v977_v30 = vld [vmem:[#allocation2 + $0x28] sm:$0xff] }
 0x2b2   :  { %v865_v32 = vsel %vm101_vm4, %v861_v63, %v863_v8  ;;  %871 = vst.msk [vmem:[#allocation2 + $0x58] sm:$0xff] %vm45_vm0, %v863_v8  ;;  %v1808_v33 = vpack.c.bf16 %v977_v30, %v974_v29  ;;  %vm1236_vm4 = vcmask 195584  }
 0x2b3   :  { %v1795_v34 = vpack.c.bf16 %v865_v32, %v845_v31 }
 0x2b4   :  { %1809 = vmatpush3.bf16.msra.mxu1 %v1808_v33 }
 0x2b5   :  { %v883_v36 = vpop.permute.xlu0 %882  ;;  %v2287_v37 = vpop.permute.xlu1 %1254  ;;  %1810 = vmatprep.subr.bf16.mxu1 %v1873_v3  ;;  %1796 = vmatprep.subr.bf16.mxu0 %v1795_v34  ;;  %v980_v41 = vld [vmem:[#allocation2 + $0x40] sm:$0xff] }
 0x2b6   :  { %891 = vst.msk [vmem:[#allocation2 + $0x70] sm:$0xff] %vm45_vm0, %v883_v36  ;;  %1798 = vmatpush1.bf16.msra.mxu0 %v1797_v35  ;;  %v885_v43 = vsel %vm122_vm5, %v881_v1, %v883_v36  ;;  %vm1262_vm5 = vcmask 187392  }
 0x2b9   :  { %v903_v39 = vpop.permute.xlu0 %902  ;;  %v2292_v40 = vpop.permute.xlu1 %1306  ;;  %v983_v42 = vld [vmem:[#allocation2 + $0x58] sm:$0xff] }
 0x2ba   :  { %v905_v44 = vsel %vm143_vm6, %v901_v5, %v903_v39  ;;  %911 = vst.msk [vmem:[#allocation2 + $0x88] sm:$0xff] %vm45_vm0, %v903_v39  ;;  %v1811_v45 = vpack.c.bf16 %v983_v42, %v980_v41  ;;  %v964_v5 = vsel %vm206_vm9, %v2245_v61, %v2262_v15  ;;  %vm1288_vm6 = vcmask 179200  }
 0x2bb   :  { %v1799_v47 = vpack.c.bf16 %v905_v44, %v885_v43 }
 0x2bc   :  { %1812 = vmatpush3.bf16.msra.mxu1 %v1811_v45 }
 0x2bd   :  { %v923_v49 = vpop.permute.xlu0 %922  ;;  %v2299_v50 = vpop.permute.xlu1 %1165  ;;  %1813 = vmatprep.subr.bf16.mxu1 %v1873_v3  ;;  %1800 = vmatprep.subr.bf16.mxu0 %v1799_v47  ;;  %v986_v54 = vld [vmem:[#allocation2 + $0x70] sm:$0xff] }
 0x2be   :  { %931 = vst.msk [vmem:[#allocation2 + $0xa0] sm:$0xff] %vm45_vm0, %v923_v49  ;;  %1802 = vmatpush1.bf16.msra.mxu0 %v1801_v48  ;;  %v925_v56 = vsel %vm164_vm7, %v2258_v10, %v923_v49  ;;  %vm1314_vm7 = vcmask 48128  }
 0x2c1   :  { %v943_v52 = vpop.permute.xlu0 %942  ;;  %v2305_v53 = vpop.permute.xlu1 %1186  ;;  %v989_v55 = vld [vmem:[#allocation2 + $0x88] sm:$0xff] }
 0x2c2   :  { %v945_v57 = vsel %vm185_vm8, %v2260_v13, %v943_v52  ;;  %951 = vst.msk [vmem:[#allocation2 + $0xb8] sm:$0xff] %vm45_vm0, %v943_v52  ;;  %v2314_v58 = vsel %vm1190_vm2, %v1185_v25, %v2305_v53  ;;  %v1814_v59 = vpack.c.bf16 %v989_v55, %v986_v54  ;;  %vm1340_vm8 = vcmask 39936  }
 0x2c3   :  { %v1803_v63 = vpack.c.bf16 %v945_v57, %v925_v56 }
 0x2c4   :  { %1815 = vmatpush3.bf16.msra.mxu1 %v1814_v59 }
 0x2c5   :  { %v963_v1 = vpop.permute.xlu0 %962  ;;  %v1210_v2 = vpop.permute.xlu1 %1209  ;;  %1816 = vmatprep.subr.bf16.mxu1 %v1873_v3  ;;  %1804 = vmatprep.subr.bf16.mxu0 %v1803_v63  ;;  %v992_v12 = vld [vmem:[#allocation2 + $0xa0] sm:$0xff] }
 0x2c6   :  { %v965_v4 = vsel %vm206_vm9, %v2262_v15, %v963_v1  ;;  %971 = vst.msk [vmem:[#allocation2 + $0xd0] sm:$0xff] %vm45_vm0, %v963_v1  ;;  %1219 = vst.msk [vmem:[#allocation2 + $0x40] sm:$0xff] %vm45_vm0, %v1210_v2  ;;  %1806 = vmatpush1.bf16.msra.mxu0 %v1805_v0  ;;  %vm1366_vm9 = vcmask 31744  }
 0x2c7   :  { %1023 = vmatprep.subr.mxu0 %v965_v4 }
 0x2c9   :  { %v1164_v9 = vpop.permute.xlu0 %1163  ;;  %v1233_v10 = vpop.permute.xlu1 %1232  ;;  %v995_v13 = vld [vmem:[#allocation2 + $0xb8] sm:$0xff] }
 0x2ca   :  { %v1170_v14 = vsel %vm1169_vm3, %v1164_v9, %v2299_v50  ;;  %v1239_v7 = vsel %vm1236_vm4, %v1233_v10, %v2264_v16  ;;  %v1817_v21 = vpack.c.bf16 %v995_v13, %v992_v12  ;;  %1024 = vmatpush1.msra.mxu0 %v964_v5 }
 0x2cb   :  { %1245 = vst.msk [vmem:[#allocation2 + $0x58] sm:$0xff] %vm45_vm0, %v1239_v7  ;;  %1601 = vmatmul.mubr.msk.f32.vlgmr.msra.gmra.mrb[4].mxu0 %vm247_vm10, %v2327_v60  ;;  %v1821_v36 = vpack.c.bf16 %v2314_v58, %v1170_v14 }
 0x2cc   :  { %1818 = vmatpush3.bf16.msra.mxu1 %v1817_v21  ;;  %1467 = vmatprep.mubr.f32.mxu0 %v1880_v6 }
 0x2cd   :  { %v1206_v61 = vpop.permute.xlu0 %1205  ;;  %v1257_v15 = vpop.permute.xlu1 %1256  ;;  %1709 = vmatprep.subr.mxu1 %v1880_v6  ;;  %v998_v16 = vld [vmem:[#allocation2 + $0xd0] sm:$0xff]  ;;  %v1384_v52 = vld [vmem:[#allocation2 + $0x40] sm:$0xff] }
 0x2ce   :  { %v2343_v11 = vsel %vm1262_vm5, %v2287_v37, %v1257_v15 }
 0x2d0   :  { %1710 = vmatpush3.msra.mxu1 %v998_v16 }
 0x2d1   :  { %v1281_v22 = vpop.permute.xlu0 %1280  ;;  %v1283_v23 = vpop.permute.xlu1 %1282  ;;  %1835 = vmatprep.subr.bf16.mxu1 %v1873_v3  ;;  %1712 = vmatmul.mubr.msk.f32.vlgmr.msra.gmra.mrb[4].mxu1 %vm247_vm10, %v2327_v60 }
 0x2d2   :  { %v1289_v24 = vsel %vm1288_vm6, %v1281_v22, %v1283_v23  ;;  %1732 = vmatprep.mubr.msk.f32.mxu1 %vm1882_vm1, %v1880_v6  ;;  %vm1211_vm1 = vcmask 326656   ;;  %v1387_v48 = vld [vmem:[#allocation2 + $0x58] sm:$0xff] }
 0x2d3   :  { %v1839_v55 = vpack.c.bf16 %v1387_v48, %v1384_v52  ;;  %v1829_v59 = vpack.c.bf16 %v1289_v24, %v2343_v11 }
 0x2d5   :  { %v1333_v25 = vpop.permute.xlu0 %1332  ;;  %v1309_v26 = vpop.permute.xlu1 %1308 }
 0x2d6   :  { %v2353_v27 = vsel %vm1314_vm7, %v2292_v40, %v1309_v26 }
 0x2d9   :  { %v1168_v8 = vpop.permute.xlu0 %1167  ;;  %v1335_v29 = vpop.permute.xlu1 %1334 }
 0x2da   :  { %v1171_v30 = vsel %vm1169_vm3, %v2299_v50, %v1168_v8  ;;  %1177 = vst.msk [vmem:[#allocation2 + $0x10] sm:$0xff] %vm45_vm0, %v1168_v8  ;;  %v2359_v31 = vsel %vm1340_vm8, %v1333_v25, %v1335_v29 }
 0x2dd   :  { %v1189_v32 = vpop.permute.xlu0 %1188  ;;  %v1361_v33 = vpop.permute.xlu1 %1360 }
 0x2de   :  { %v1192_v34 = vsel %vm1190_vm2, %v2305_v53, %v1189_v32  ;;  %1198 = vst.msk [vmem:[#allocation2 + $0x28] sm:$0xff] %vm45_vm0, %v1189_v32 }
 0x2df   :  { %v1819_v35 = vpack.c.bf16 %v1192_v34, %v1171_v30 }
 0x2e1   :  { %v1208_v37 = vpop.permute.xlu0 %1207  ;;  %v1359_v38 = vpop.permute.xlu1 %1358  ;;  %1820 = vmatprep.subr.bf16.mxu0 %v1819_v35  ;;  %v1378_v43 = vld [vmem:[#allocation2 + $0x10] sm:$0xff] }
 0x2e2   :  { %v1212_v39 = vsel %vm1211_vm1, %v1206_v61, %v1208_v37  ;;  %v1213_v40 = vsel %vm1211_vm1, %v1208_v37, %v1210_v2  ;;  %v1367_v41 = vsel %vm1366_vm9, %v1359_v38, %v1361_v33  ;;  %1822 = vmatpush1.bf16.msra.mxu0 %v1821_v36 }
 0x2e5   :  { %v1231_v42 = vpop.permute.xlu0 %1230  ;;  %v1381_v44 = vld [vmem:[#allocation2 + $0x28] sm:$0xff] }
 0x2e6   :  { %v1237_v45 = vsel %vm1236_vm4, %v2282_v28, %v1231_v42  ;;  %v1238_v46 = vsel %vm1236_vm4, %v1231_v42, %v1233_v10  ;;  %v1836_v47 = vpack.c.bf16 %v1381_v44, %v1378_v43  ;;  %v1833_v10 = vpack.c.bf16 %v2359_v31, %v2353_v27 }
 0x2e7   :  { %v1823_v49 = vpack.c.bf16 %v1238_v46, %v1213_v40  ;;  %v1825_v50 = vpack.c.bf16 %v1237_v45, %v1212_v39 }
 0x2e8   :  { %1837 = vmatpush3.bf16.msra.mxu1 %v1836_v47 }
 0x2e9   :  { %v1259_v51 = vpop.permute.xlu0 %1258  ;;  %1838 = vmatprep.subr.bf16.mxu1 %v1873_v3  ;;  %1824 = vmatprep.subr.bf16.mxu0 %v1823_v49 }
 0x2ea   :  { %v1264_v53 = vsel %vm1262_vm5, %v1257_v15, %v1259_v51  ;;  %v1265_v54 = vsel %vm1262_vm5, %v1259_v51, %v2266_v17  ;;  %1826 = vmatpush1.bf16.msra.mxu0 %v1825_v50 }
 0x2eb   :  { %1271 = vst.msk [vmem:[#allocation2 + $0x70] sm:$0xff] %vm45_vm0, %v1265_v54 }
 0x2ec   :  { %1840 = vmatpush3.bf16.msra.mxu1 %v1839_v55 }
 0x2ed   :  { %v1285_v28 = vpop.permute.xlu0 %1284  ;;  %1841 = vmatprep.subr.bf16.mxu1 %v1873_v3 }
 0x2ee   :  { %v1290_v56 = vsel %vm1288_vm6, %v1283_v23, %v1285_v28  ;;  %v1291_v57 = vsel %vm1288_vm6, %v1285_v28, %v2268_v18 }
 0x2ef   :  { %1297 = vst.msk [vmem:[#allocation2 + $0x88] sm:$0xff] %vm45_vm0, %v1291_v57  ;;  %v1827_v58 = vpack.c.bf16 %v1290_v56, %v1264_v53 }
 0x2f1   :  { %v1311_v62 = vpop.permute.xlu0 %1310  ;;  %1828 = vmatprep.subr.bf16.mxu0 %v1827_v58 }
 0x2f2   :  { %v1316_v17 = vsel %vm1314_vm7, %v1309_v26, %v1311_v62  ;;  %v1317_v63 = vsel %vm1314_vm7, %v1311_v62, %v2270_v19  ;;  %1830 = vmatpush1.bf16.msra.mxu0 %v1829_v59  ;;  %v1390_v2 = vld [vmem:[#allocation2 + $0x70] sm:$0xff] }
 0x2f3   :  { %1323 = vst.msk [vmem:[#allocation2 + $0xa0] sm:$0xff] %vm45_vm0, %v1317_v63 }
 0x2f5   :  { %v1337_v0 = vpop.permute.xlu0 %1336 }
 0x2f6   :  { %v1342_v1 = vsel %vm1340_vm8, %v1335_v29, %v1337_v0  ;;  %v1343_v18 = vsel %vm1340_vm8, %v1337_v0, %v2273_v20  ;;  %v1393_v4 = vld [vmem:[#allocation2 + $0x88] sm:$0xff] }
 0x2f7   :  { %1349 = vst.msk [vmem:[#allocation2 + $0xb8] sm:$0xff] %vm45_vm0, %v1343_v18  ;;  %v1842_v5 = vpack.c.bf16 %v1393_v4, %v1390_v2  ;;  %v1831_v9 = vpack.c.bf16 %v1342_v1, %v1316_v17 }
 0x2f9   :  { %1843 = vmatpush3.bf16.msra.mxu1 %v1842_v5  ;;  %v1363_v19 = vpop.permute.xlu0 %1362  ;;  %1832 = vmatprep.subr.bf16.mxu0 %v1831_v9 }
 0x2fa   :  { %v1368_v12 = vsel %vm1366_vm9, %v1361_v33, %v1363_v19  ;;  %1844 = vmatprep.subr.bf16.mxu1 %v1873_v3  ;;  %1834 = vmatpush1.bf16.msra.mxu0 %v1833_v10  ;;  %v1396_v14 = vld [vmem:[#allocation2 + $0xa0] sm:$0xff]  ;;  %v1002_v3 = vpop.permute.xlu1 %1001 }
 0x2fb   :  { %1419 = vmatprep.subr.mxu0 %v1368_v12 }
 0x2fd   :  { %v1365_v13 = vpop.permute.xlu0 %1364 }
 0x2fe   :  { %v1369_v20 = vsel %vm1366_vm9, %v1363_v19, %v1365_v13  ;;  %v1399_v7 = vld [vmem:[#allocation2 + $0xb8] sm:$0xff]  ;;  %1420 = vmatpush1.msra.mxu0 %v1367_v41 }
 0x2ff   :  { %1375 = vst.msk [vmem:[#allocation2 + $0xd0] sm:$0xff] %vm45_vm0, %v1369_v20  ;;  %v1845_v21 = vpack.c.bf16 %v1399_v7, %v1396_v14  ;;  %1603 = vmatmul.mubr.msk.f32.vlgmr.msra.gmra.mrb[6].mxu0 %vm247_vm10, %v2327_v60 }
 0x301   :  { %1846 = vmatpush3.bf16.msra.mxu1 %v1845_v21 }
 0x302   :  { %1730 = vmatprep.subr.mxu1 %v1880_v6 }
 0x306   :  { %v1402_v61 = vld [vmem:[#allocation2 + $0xd0] sm:$0xff] }
 0x307   :  { %1731 = vmatpush3.msra.mxu1 %v1402_v61 }
 0x308   :  { %1733 = vmatmul.mubr.msk.f32.vlgmr.msra.gmra.mrb[6].mxu1 %vm247_vm10, %v2327_v60 }
 0x39e   :  { %v1073_v15 = vpop.f32.mrb[4].mxu0 }
 0x39f   :  { %v1074_v11 = vadd.f32 %v1073_v15, %v1002_v3  ;;  %v1075_v16 = vpop.f32.mrb[5].mxu0 }
 0x3a0   :  { %v1076_v22 = vadd.f32 %v1075_v16, %v1002_v3 }
 0x3a1   :  { %1148 = vst [vmem:[%s2446_s7] sm:$0xff] %v1074_v11  ;;  %v1151_v23 = vmax.f32 %v1074_v11, 0.0 }
 0x3a2   :  { %1149 = vst [vmem:[%s2446_s7 + $0x8] sm:$0xff] %v1076_v22  ;;  %v1152_v6 = vmax.f32 %v1076_v22, 0.0 }
 0x3a3   :  { %1154 = vst [vmem:[%s2447_s8] sm:$0xff] %v1151_v23 }
 0x3a4   :  { %1155 = vst [vmem:[%s2447_s8 + $0x8] sm:$0xff] %v1152_v6  ;;  %v1144_v60 = vpop.f32.mrb[4].mxu1 }
 0x3a5   :  { %v1145_v24 = vadd.f32 %v1144_v60, %v1002_v3  ;;  %v1713_v25 = vpop.f32.mrb[5].mxu1 }
 0x3a7   :  { %1150 = vst.msk [vmem:[%s2446_s7 + $0x10] sm:$0xff] %vm45_vm0, %v1145_v24  ;;  %v1153_v26 = vmax.f32 %v1145_v24, 0.0 }
 0x3a9   :  { %1156 = vst.msk [vmem:[%s2447_s8 + $0x10] sm:$0xff] %vm45_vm0, %v1153_v26 }
 0x3d2   :  { %v1469_v27 = vpop.f32.mrb[6].mxu0 }
 0x3d3   :  { %v1470_v8 = vadd.f32 %v1469_v27, %v1002_v3  ;;  %v1471_v29 = vpop.f32.mrb[7].mxu0 }
 0x3d4   :  { %v1472_v30 = vadd.f32 %v1471_v29, %v1002_v3 }
 0x3d5   :  { %1605 = vst [vmem:[%s2446_s7 + $0x18] sm:$0xff] %v1470_v8  ;;  %v1548_v31 = vmax.f32 %v1470_v8, 0.0 }
 0x3d6   :  { %1606 = vst [vmem:[%s2446_s7 + $0x20] sm:$0xff] %v1472_v30  ;;  %v1549_v32 = vmax.f32 %v1472_v30, 0.0 }
 0x3d7   :  { %1608 = vst [vmem:[%s2447_s8 + $0x18] sm:$0xff] %v1548_v31 }
 0x3d8   :  { %1609 = vst [vmem:[%s2447_s8 + $0x20] sm:$0xff] %v1549_v32 }
 0x3db   :  { %v1540_v33 = vpop.f32.mrb[6].mxu1 }
 0x3dc   :  { %v1541_v34 = vadd.f32 %v1540_v33, %v1002_v3  ;;  %v1734_v35 = vpop.f32.mrb[7].mxu1 }
 0x3de   :  { %1607 = vst.msk [vmem:[%s2446_s7 + $0x28] sm:$0xff] %vm45_vm0, %v1541_v34  ;;  %v1550_v36 = vmax.f32 %v1541_v34, 0.0 }
 0x3e0   :  { %1610 = vst.msk [vmem:[%s2447_s8 + $0x28] sm:$0xff] %vm45_vm0, %v1550_v36 }

</bundles_post_ra>
